<compile_context>
chip_gen: v5e
topology: v5e:2x2
jax: 0.10.0
libtpu: 0.0.40
codegen_flags: <defaults>
</compile_context>

<pallas_src>
import numpy as np
import jax
import jax.numpy as jnp
from jax.experimental import pallas as pl
from jax.experimental.pallas import tpu as pltpu

# ------------------------- model hyper-parameters -------------------------
BATCH        = 2
OBS_SHAPE    = (4, 16, 16)          # (C, H, W) -- PyTorch convention
C_IN         = OBS_SHAPE[0]
ACT_DIM      = 4
HIDDEN_DIM   = 32
ENC_FEAT_DIM = 32
NUM_FILTERS  = 8
K            = 3
LOG_STD_MIN  = -10.0
LOG_STD_MAX  = 2.0
LN_EPS       = 1e-5

OH1 = (OBS_SHAPE[1] - K) // 2 + 1   # conv1: 3x3 stride 2 -> 7
OW1 = (OBS_SHAPE[2] - K) // 2 + 1
OH2 = OH1 - (K - 1)                 # conv2: 3x3 stride 1 -> 5
OW2 = OW1 - (K - 1)
S0  = OBS_SHAPE[1] * OBS_SHAPE[2]   # 256
S1  = OH1 * OW1                     # 49
S2  = OH2 * OW2                     # 25
FLAT_DIM  = NUM_FILTERS * S2        # 200
OUT_LANES = 128                     # lane-dense output slab width

_VMEM = pltpu.MemorySpace.VMEM


# ----------------------- constant spatial-gather matrices ------------------
def _build_gather(h_in, w_in, stride):
    """0/1 matrix G (S_in, 9*S_out): (X @ G)[:, t*S_out + p_out] = X[:, p_in(t, p_out)]."""
    h_out = (h_in - K) // stride + 1
    w_out = (w_in - K) // stride + 1
    g = np.zeros((h_in * w_in, 9 * h_out * w_out), np.float32)
    for ky in range(K):
        for kx in range(K):
            t = ky * K + kx
            for oh in range(h_out):
                for ow in range(w_out):
                    p_in = (stride * oh + ky) * w_in + (stride * ow + kx)
                    p_out = oh * w_out + ow
                    g[p_in, t * h_out * w_out + p_out] = 1.0
    return g


# ------------------------------ fused Pallas kernel ------------------------
def actor_fused_kernel(obs_ref, g1_ref, w1_ref, b1_ref, g2_ref, w2_ref, b2_ref,
                       fcw_ref, fcb_ref, lng_ref, lnb_ref,
                       t1w_ref, t1b_ref, t2w_ref, t2b_ref, t3w_ref, t3b_ref,
                       noise_ref, out_ref):
    """Whole Actor forward pass on VMEM-resident blocks (single invocation)."""
    x = obs_ref[...]                                       # (B*C, S0)

    # `if obs.max() > 1.0: obs = obs / 255.0`  (decided in-kernel, no HBM pass)
    m = jnp.max(x, axis=1, keepdims=True)                  # (B*C, 1)
    m = jnp.max(m, axis=0, keepdims=True)                  # (1, 1)
    scale = jnp.where(m > 1.0, jnp.float32(1.0 / 255.0), jnp.float32(1.0))
    x = x * scale

    # conv1 spatial gather for all 9 taps at once: (B*C, 9*S1)
    p1 = jnp.dot(x, g1_ref[...], preferred_element_type=jnp.float32)

    w1 = w1_ref[...]        # (9*F, C)   rows t*F + f
    w2 = w2_ref[...]        # (9*F, F)
    g2 = g2_ref[...]        # (S1, 9*S2)
    b1 = b1_ref[...]        # (F, 1)
    b2 = b2_ref[...]        # (F, 1)
    fcw = fcw_ref[...]      # (F*S2, FEAT)  rows f*S2 + p  (NCHW flatten baked in)
    fcb = fcb_ref[...]      # (1, FEAT)
    lng = lng_ref[...]
    lnb = lnb_ref[...]
    t1w = t1w_ref[...]; t1b = t1b_ref[...]
    t2w = t2w_ref[...]; t2b = t2b_ref[...]
    t3w = t3w_ref[...]; t3b = t3b_ref[...]
    noise = noise_ref[...]  # (B, ACT_DIM)

    for b in range(BATCH):
        # ---------------- conv1 (stride 2) + ReLU: 9 per-tap dots ----------
        pb = p1[b * C_IN:(b + 1) * C_IN, :]                # (C, 9*S1)
        acc1 = None
        for t in range(9):
            wt = w1[t * NUM_FILTERS:(t + 1) * NUM_FILTERS, :]      # (F, C)
            xt = pb[:, t * S1:(t + 1) * S1]                        # (C, S1)
            d = jnp.dot(wt, xt, preferred_element_type=jnp.float32)
            acc1 = d if acc1 is None else acc1 + d
        a1 = jnp.maximum(acc1 + b1, 0.0)                   # (F, S1)

        # ---------------- conv2 (stride 1) + ReLU ---------------------------
        p2 = jnp.dot(a1, g2, preferred_element_type=jnp.float32)   # (F, 9*S2)
        acc2 = None
        for t in range(9):
            wt = w2[t * NUM_FILTERS:(t + 1) * NUM_FILTERS, :]      # (F, F)
            xt = p2[:, t * S2:(t + 1) * S2]                        # (F, S2)
            d = jnp.dot(wt, xt, preferred_element_type=jnp.float32)
            acc2 = d if acc2 is None else acc2 + d
        a2 = jnp.maximum(acc2 + b2, 0.0)                   # (F, S2)  [f, oh*OW2+ow]

        # ------------- encoder FC (NCHW flatten via per-channel slices) -----
        hf = fcb                                           # (1, FEAT)
        for f in range(NUM_FILTERS):
            hf = hf + jnp.dot(a2[f:f + 1, :], fcw[f * S2:(f + 1) * S2, :],
                              preferred_element_type=jnp.float32)

        # ------------- LayerNorm (output_logits=True -> no tanh) ------------
        mean = jnp.mean(hf, axis=-1, keepdims=True)
        var = jnp.mean((hf - mean) * (hf - mean), axis=-1, keepdims=True)
        hn = (hf - mean) * jax.lax.rsqrt(var + LN_EPS) * lng + lnb

        # ------------- trunk MLP --------------------------------------------
        z = jnp.maximum(jnp.dot(hn, t1w, preferred_element_type=jnp.float32) + t1b, 0.0)
        z = jnp.maximum(jnp.dot(z, t2w, preferred_element_type=jnp.float32) + t2b, 0.0)
        o = jnp.dot(z, t3w, preferred_element_type=jnp.float32) + t3b   # (1, 2*ACT)

        # ------------- SAC Gaussian policy head -----------------------------
        mu = o[:, :ACT_DIM]
        log_std = jnp.tanh(o[:, ACT_DIM:])
        log_std = LOG_STD_MIN + 0.5 * (LOG_STD_MAX - LOG_STD_MIN) * (log_std + 1.0)
        std = jnp.exp(log_std)
        nb = noise[b:b + 1, :]
        pi = mu + nb * std

        residual = jnp.sum(-0.5 * nb * nb - log_std, axis=-1, keepdims=True)
        log_pi = residual - 0.5 * float(np.log(2.0 * np.pi)) * ACT_DIM

        mu_t = jnp.tanh(mu)
        pi_t = jnp.tanh(pi)
        log_pi = log_pi - jnp.sum(
            jnp.log(jnp.maximum(1.0 - pi_t * pi_t, 0.0) + 1e-6),
            axis=-1, keepdims=True)

        # lane-dense output row: [mu | pi | log_std | log_pi | 0 pad]
        pad = jnp.zeros((1, OUT_LANES - (3 * ACT_DIM + 1)), jnp.float32)
        row = jnp.concatenate([mu_t, pi_t, log_std, log_pi, pad], axis=-1)
        out_ref[pl.ds(b, 1), :] = row


# ------------------------------ pallas wrapper -----------------------------
def actor_forward(obs_nchw, params, noise):
    B = obs_nchw.shape[0]
    # pure-metadata reshape: (B, C, H, W) -> (B*C, H*W); all compute is in-kernel
    obs2d = obs_nchw.astype(jnp.float32).reshape(B * C_IN, S0)

    slab = pl.pallas_call(
        actor_fused_kernel,
        out_shape=jax.ShapeDtypeStruct((B, OUT_LANES), jnp.float32),
        in_specs=[pl.BlockSpec(memory_space=_VMEM)] * 18,
        out_specs=pl.BlockSpec(memory_space=_VMEM),
    )(obs2d,
      params["g1"], params["w1t"], params["b1"],
      params["g2"], params["w2t"], params["b2"],
      params["fc_w"], params["fc_b"], params["ln_g"], params["ln_b"],
      params["t1_w"], params["t1_b"], params["t2_w"], params["t2_b"],
      params["t3_w"], params["t3_b"],
      noise)

    mu = slab[:, 0:ACT_DIM]
    pi = slab[:, ACT_DIM:2 * ACT_DIM]
    log_std = slab[:, 2 * ACT_DIM:3 * ACT_DIM]
    log_pi = slab[:, 3 * ACT_DIM:3 * ACT_DIM + 1]
    return mu, pi, log_pi, log_std


# ----------------------------- parameter setup -----------------------------
def init_reference_params(key):
    """Synthetic weights in the PyTorch layouts (used for the plain-JAX check)."""
    ks = jax.random.split(key, 12)

    def nrm(k, shape, scale):
        return scale * jax.random.normal(k, shape, dtype=jnp.float32)

    C = C_IN
    return {
        "conv1_w": nrm(ks[0], (NUM_FILTERS, C, K, K), 0.1),
        "conv1_b": nrm(ks[1], (NUM_FILTERS,), 0.1),
        "conv2_w": nrm(ks[2], (NUM_FILTERS, NUM_FILTERS, K, K), 0.1),
        "conv2_b": nrm(ks[3], (NUM_FILTERS,), 0.1),
        "fc_w": nrm(ks[4], (FLAT_DIM, ENC_FEAT_DIM), 0.05),   # rows = NCHW flat index
        "fc_b": nrm(ks[5], (1, ENC_FEAT_DIM), 0.05),
        "ln_g": 1.0 + nrm(ks[6], (1, ENC_FEAT_DIM), 0.05),
        "ln_b": nrm(ks[7], (1, ENC_FEAT_DIM), 0.05),
        "t1_w": nrm(ks[8], (ENC_FEAT_DIM, HIDDEN_DIM), 0.1),
        "t1_b": jnp.zeros((1, HIDDEN_DIM), jnp.float32),
        "t2_w": nrm(ks[9], (HIDDEN_DIM, HIDDEN_DIM), 0.1),
        "t2_b": jnp.zeros((1, HIDDEN_DIM), jnp.float32),
        "t3_w": nrm(ks[10], (HIDDEN_DIM, 2 * ACT_DIM), 0.1),
        "t3_b": nrm(ks[11], (1, 2 * ACT_DIM), 0.05),
    }


def make_kernel_params(ref):
    """Re-layout the reference weights for the fused kernel (zero runtime cost)."""
    def per_tap(w):   # (F, Cin, 3, 3) -> (9*F, Cin), row index = t*F + f
        f, cin = w.shape[0], w.shape[1]
        return jnp.transpose(w, (2, 3, 0, 1)).reshape(9 * f, cin)

    return {
        "g1": jnp.asarray(_build_gather(OBS_SHAPE[1], OBS_SHAPE[2], 2)),  # (256, 441)
        "g2": jnp.asarray(_build_gather(OH1, OW1, 1)),                    # (49, 225)
        "w1t": per_tap(ref["conv1_w"]),
        "b1": ref["conv1_b"].reshape(NUM_FILTERS, 1),
        "w2t": per_tap(ref["conv2_w"]),
        "b2": ref["conv2_b"].reshape(NUM_FILTERS, 1),
        "fc_w": ref["fc_w"], "fc_b": ref["fc_b"],
        "ln_g": ref["ln_g"], "ln_b": ref["ln_b"],
        "t1_w": ref["t1_w"], "t1_b": ref["t1_b"],
        "t2_w": ref["t2_w"], "t2_b": ref["t2_b"],
        "t3_w": ref["t3_w"], "t3_b": ref["t3_b"],
    }


# ------------------------- plain-JAX reference (check) ----------------------
def actor_forward_reference(obs, ref, noise):
    x = jnp.where(jnp.max(obs) > 1.0, obs / 255.0, obs)
    x = jax.lax.conv_general_dilated(
        x, ref["conv1_w"], window_strides=(2, 2), padding="VALID",
        dimension_numbers=("NCHW", "OIHW", "NCHW")) + ref["conv1_b"][None, :, None, None]
    x = jnp.maximum(x, 0.0)
    x = jax.lax.conv_general_dilated(
        x, ref["conv2_w"], window_strides=(1, 1), padding="VALID",
        dimension_numbers=("NCHW", "OIHW", "NCHW")) + ref["conv2_b"][None, :, None, None]
    x = jnp.maximum(x, 0.0)
    h = x.reshape(x.shape[0], -1)                          # NCHW flatten
    hf = h @ ref["fc_w"] + ref["fc_b"]
    mean = jnp.mean(hf, axis=-1, keepdims=True)
    var = jnp.mean((hf - mean) ** 2, axis=-1, keepdims=True)
    hn = (hf - mean) / jnp.sqrt(var + LN_EPS) * ref["ln_g"] + ref["ln_b"]
    z = jnp.maximum(hn @ ref["t1_w"] + ref["t1_b"], 0.0)
    z = jnp.maximum(z @ ref["t2_w"] + ref["t2_b"], 0.0)
    o = z @ ref["t3_w"] + ref["t3_b"]
    mu, log_std = o[:, :ACT_DIM], o[:, ACT_DIM:]
    log_std = jnp.tanh(log_std)
    log_std = LOG_STD_MIN + 0.5 * (LOG_STD_MAX - LOG_STD_MIN) * (log_std + 1.0)
    std = jnp.exp(log_std)
    pi = mu + noise * std
    residual = jnp.sum(-0.5 * noise ** 2 - log_std, axis=-1, keepdims=True)
    log_pi = residual - 0.5 * np.log(2.0 * np.pi) * ACT_DIM
    mu, pi = jnp.tanh(mu), jnp.tanh(pi)
    log_pi = log_pi - jnp.sum(jnp.log(jnp.maximum(1.0 - pi ** 2, 0.0) + 1e-6),
                              axis=-1, keepdims=True)
    return mu, pi, log_pi, log_std


# ----------------------------------- main -----------------------------------
if __name__ == "__main__":
    key = jax.random.PRNGKey(0)
    k_obs, k_noise, k_params = jax.random.split(key, 3)

    ref_params = init_reference_params(k_params)
    kernel_params = make_kernel_params(ref_params)

    # pixel-valued observations in [0, 255] so the /255 branch is exercised
    obs = jax.random.uniform(k_obs, (BATCH,) + OBS_SHAPE, dtype=jnp.float32,
                             minval=0.0, maxval=255.0)
    # torch.randn_like(mu) equivalent, generated deterministically outside the kernel
    noise = jax.random.normal(k_noise, (BATCH, ACT_DIM), dtype=jnp.float32)

    mu, pi, log_pi, log_std = jax.jit(actor_forward)(obs, kernel_params, noise)
    jax.block_until_ready((mu, pi, log_pi, log_std))

    # shape / sanity checks
    assert mu.shape == (BATCH, ACT_DIM) and pi.shape == (BATCH, ACT_DIM)
    assert log_pi.shape == (BATCH, 1) and log_std.shape == (BATCH, ACT_DIM)
    for v in (mu, pi, log_pi, log_std):
        assert bool(jnp.all(jnp.isfinite(v)))
    assert bool(jnp.all(log_std >= LOG_STD_MIN)) and bool(jnp.all(log_std <= LOG_STD_MAX))

    # numerical check against a plain-JAX transcription of the PyTorch module
    r_mu, r_pi, r_log_pi, r_log_std = actor_forward_reference(obs, ref_params, noise)
    for name, a, b in (("mu", mu, r_mu), ("pi", pi, r_pi),
                       ("log_pi", log_pi, r_log_pi), ("log_std", log_std, r_log_std)):
        assert bool(jnp.allclose(a, b, atol=2e-2, rtol=2e-2)), f"{name} mismatch"

    print("KERNEL_OK")
</pallas_src>

<mosaic_0001>
module attributes {stable_mosaic.version = 11 : i64} {
  func.func @actor_fused_kernel(%arg0: memref<8x256xf32, #tpu.memory_space<vmem>>, %arg1: memref<256x441xf32, #tpu.memory_space<vmem>>, %arg2: memref<72x4xf32, #tpu.memory_space<vmem>>, %arg3: memref<8x1xf32, #tpu.memory_space<vmem>>, %arg4: memref<49x225xf32, #tpu.memory_space<vmem>>, %arg5: memref<72x8xf32, #tpu.memory_space<vmem>>, %arg6: memref<8x1xf32, #tpu.memory_space<vmem>>, %arg7: memref<200x32xf32, #tpu.memory_space<vmem>>, %arg8: memref<1x32xf32, #tpu.memory_space<vmem>>, %arg9: memref<1x32xf32, #tpu.memory_space<vmem>>, %arg10: memref<1x32xf32, #tpu.memory_space<vmem>>, %arg11: memref<32x32xf32, #tpu.memory_space<vmem>>, %arg12: memref<1x32xf32, #tpu.memory_space<vmem>>, %arg13: memref<32x32xf32, #tpu.memory_space<vmem>>, %arg14: memref<1x32xf32, #tpu.memory_space<vmem>>, %arg15: memref<32x8xf32, #tpu.memory_space<vmem>>, %arg16: memref<1x8xf32, #tpu.memory_space<vmem>>, %arg17: memref<2x4xf32, #tpu.memory_space<vmem>>, %arg18: memref<2x128xf32, #tpu.memory_space<vmem>>) attributes {dimension_semantics = [], scalar_prefetch = 0 : i64, scratch_operands = 0 : i64, tpu.core_type = #tpu.core_type<tc>} {
    %c0 = arith.constant 0 : index
    %c0_0 = arith.constant 0 : index
    %0 = vector.load %arg0[%c0, %c0_0] : memref<8x256xf32, #tpu.memory_space<vmem>>, vector<8x256xf32>
    %cst = arith.constant dense<0xFF800000> : vector<8xf32>
    %1 = vector.multi_reduction <maximumf>, %0, %cst [1] : vector<8x256xf32> to vector<8xf32>
    %2 = vector.shape_cast %1 : vector<8xf32> to vector<8x1xf32>
    %cst_1 = arith.constant dense<0xFF800000> : vector<1xf32>
    %3 = vector.multi_reduction <maximumf>, %2, %cst_1 [0] : vector<8x1xf32> to vector<1xf32>
    %4 = vector.shape_cast %3 : vector<1xf32> to vector<1x1xf32>
    %cst_2 = arith.constant 1.000000e+00 : f32
    %5 = vector.broadcast %cst_2 : f32 to vector<1x1xf32>
    %6 = arith.cmpf ogt, %4, %5 : vector<1x1xf32>
    %cst_3 = arith.constant 0.00392156886 : f32
    %cst_4 = arith.constant 1.000000e+00 : f32
    %7 = vector.broadcast %cst_3 : f32 to vector<1x1xf32>
    %8 = vector.broadcast %cst_4 : f32 to vector<1x1xf32>
    %9 = arith.select %6, %7, %8 : vector<1x1xi1>, vector<1x1xf32>
    %10 = vector.broadcast %9 : vector<1x1xf32> to vector<8x256xf32>
    %11 = arith.mulf %0, %10 : vector<8x256xf32>
    %c0_5 = arith.constant 0 : index
    %c0_6 = arith.constant 0 : index
    %12 = vector.load %arg1[%c0_5, %c0_6] : memref<256x441xf32, #tpu.memory_space<vmem>>, vector<256x441xf32>
    %cst_7 = arith.constant dense<0.000000e+00> : vector<8x441xf32>
    %13 = tpu.matmul %11, %12, %cst_7 {dimension_numbers = #tpu.dot_dimension_numbers<[1], [0], [0], [1], [0, 0, 1, 1], [], []>} : vector<8x256xf32>, vector<256x441xf32>, vector<8x441xf32> -> vector<8x441xf32>
    %c0_8 = arith.constant 0 : index
    %c0_9 = arith.constant 0 : index
    %14 = vector.load %arg2[%c0_8, %c0_9] : memref<72x4xf32, #tpu.memory_space<vmem>>, vector<72x4xf32>
    %c0_10 = arith.constant 0 : index
    %c0_11 = arith.constant 0 : index
    %15 = vector.load %arg5[%c0_10, %c0_11] : memref<72x8xf32, #tpu.memory_space<vmem>>, vector<72x8xf32>
    %c0_12 = arith.constant 0 : index
    %c0_13 = arith.constant 0 : index
    %16 = vector.load %arg4[%c0_12, %c0_13] : memref<49x225xf32, #tpu.memory_space<vmem>>, vector<49x225xf32>
    %c0_14 = arith.constant 0 : index
    %c0_15 = arith.constant 0 : index
    %17 = vector.load %arg3[%c0_14, %c0_15] : memref<8x1xf32, #tpu.memory_space<vmem>>, vector<8x1xf32>
    %c0_16 = arith.constant 0 : index
    %c0_17 = arith.constant 0 : index
    %18 = vector.load %arg6[%c0_16, %c0_17] : memref<8x1xf32, #tpu.memory_space<vmem>>, vector<8x1xf32>
    %c0_18 = arith.constant 0 : index
    %c0_19 = arith.constant 0 : index
    %19 = vector.load %arg7[%c0_18, %c0_19] : memref<200x32xf32, #tpu.memory_space<vmem>>, vector<200x32xf32>
    %c0_20 = arith.constant 0 : index
    %c0_21 = arith.constant 0 : index
    %20 = vector.load %arg8[%c0_20, %c0_21] : memref<1x32xf32, #tpu.memory_space<vmem>>, vector<1x32xf32>
    %c0_22 = arith.constant 0 : index
    %c0_23 = arith.constant 0 : index
    %21 = vector.load %arg9[%c0_22, %c0_23] : memref<1x32xf32, #tpu.memory_space<vmem>>, vector<1x32xf32>
    %c0_24 = arith.constant 0 : index
    %c0_25 = arith.constant 0 : index
    %22 = vector.load %arg10[%c0_24, %c0_25] : memref<1x32xf32, #tpu.memory_space<vmem>>, vector<1x32xf32>
    %c0_26 = arith.constant 0 : index
    %c0_27 = arith.constant 0 : index
    %23 = vector.load %arg11[%c0_26, %c0_27] : memref<32x32xf32, #tpu.memory_space<vmem>>, vector<32x32xf32>
    %c0_28 = arith.constant 0 : index
    %c0_29 = arith.constant 0 : index
    %24 = vector.load %arg12[%c0_28, %c0_29] : memref<1x32xf32, #tpu.memory_space<vmem>>, vector<1x32xf32>
    %c0_30 = arith.constant 0 : index
    %c0_31 = arith.constant 0 : index
    %25 = vector.load %arg13[%c0_30, %c0_31] : memref<32x32xf32, #tpu.memory_space<vmem>>, vector<32x32xf32>
    %c0_32 = arith.constant 0 : index
    %c0_33 = arith.constant 0 : index
    %26 = vector.load %arg14[%c0_32, %c0_33] : memref<1x32xf32, #tpu.memory_space<vmem>>, vector<1x32xf32>
    %c0_34 = arith.constant 0 : index
    %c0_35 = arith.constant 0 : index
    %27 = vector.load %arg15[%c0_34, %c0_35] : memref<32x8xf32, #tpu.memory_space<vmem>>, vector<32x8xf32>
    %c0_36 = arith.constant 0 : index
    %c0_37 = arith.constant 0 : index
    %28 = vector.load %arg16[%c0_36, %c0_37] : memref<1x8xf32, #tpu.memory_space<vmem>>, vector<1x8xf32>
    %c0_38 = arith.constant 0 : index
    %c0_39 = arith.constant 0 : index
    %29 = vector.load %arg17[%c0_38, %c0_39] : memref<2x4xf32, #tpu.memory_space<vmem>>, vector<2x4xf32>
    %30 = vector.extract_strided_slice %13 {offsets = [0, 0], sizes = [4, 441], strides = [1, 1]} : vector<8x441xf32> to vector<4x441xf32>
    %31 = vector.extract_strided_slice %14 {offsets = [0, 0], sizes = [8, 4], strides = [1, 1]} : vector<72x4xf32> to vector<8x4xf32>
    %32 = vector.extract_strided_slice %30 {offsets = [0, 0], sizes = [4, 49], strides = [1, 1]} : vector<4x441xf32> to vector<4x49xf32>
    %cst_40 = arith.constant dense<0.000000e+00> : vector<8x49xf32>
    %33 = tpu.matmul %31, %32, %cst_40 {dimension_numbers = #tpu.dot_dimension_numbers<[1], [0], [0], [1], [0, 0, 1, 1], [], []>} : vector<8x4xf32>, vector<4x49xf32>, vector<8x49xf32> -> vector<8x49xf32>
    %34 = vector.extract_strided_slice %14 {offsets = [8, 0], sizes = [8, 4], strides = [1, 1]} : vector<72x4xf32> to vector<8x4xf32>
    %35 = vector.extract_strided_slice %30 {offsets = [0, 49], sizes = [4, 49], strides = [1, 1]} : vector<4x441xf32> to vector<4x49xf32>
    %cst_41 = arith.constant dense<0.000000e+00> : vector<8x49xf32>
    %36 = tpu.matmul %34, %35, %cst_41 {dimension_numbers = #tpu.dot_dimension_numbers<[1], [0], [0], [1], [0, 0, 1, 1], [], []>} : vector<8x4xf32>, vector<4x49xf32>, vector<8x49xf32> -> vector<8x49xf32>
    %37 = arith.addf %33, %36 : vector<8x49xf32>
    %38 = vector.extract_strided_slice %14 {offsets = [16, 0], sizes = [8, 4], strides = [1, 1]} : vector<72x4xf32> to vector<8x4xf32>
    %39 = vector.extract_strided_slice %30 {offsets = [0, 98], sizes = [4, 49], strides = [1, 1]} : vector<4x441xf32> to vector<4x49xf32>
    %cst_42 = arith.constant dense<0.000000e+00> : vector<8x49xf32>
    %40 = tpu.matmul %38, %39, %cst_42 {dimension_numbers = #tpu.dot_dimension_numbers<[1], [0], [0], [1], [0, 0, 1, 1], [], []>} : vector<8x4xf32>, vector<4x49xf32>, vector<8x49xf32> -> vector<8x49xf32>
    %41 = arith.addf %37, %40 : vector<8x49xf32>
    %42 = vector.extract_strided_slice %14 {offsets = [24, 0], sizes = [8, 4], strides = [1, 1]} : vector<72x4xf32> to vector<8x4xf32>
    %43 = vector.extract_strided_slice %30 {offsets = [0, 147], sizes = [4, 49], strides = [1, 1]} : vector<4x441xf32> to vector<4x49xf32>
    %cst_43 = arith.constant dense<0.000000e+00> : vector<8x49xf32>
    %44 = tpu.matmul %42, %43, %cst_43 {dimension_numbers = #tpu.dot_dimension_numbers<[1], [0], [0], [1], [0, 0, 1, 1], [], []>} : vector<8x4xf32>, vector<4x49xf32>, vector<8x49xf32> -> vector<8x49xf32>
    %45 = arith.addf %41, %44 : vector<8x49xf32>
    %46 = vector.extract_strided_slice %14 {offsets = [32, 0], sizes = [8, 4], strides = [1, 1]} : vector<72x4xf32> to vector<8x4xf32>
    %47 = vector.extract_strided_slice %30 {offsets = [0, 196], sizes = [4, 49], strides = [1, 1]} : vector<4x441xf32> to vector<4x49xf32>
    %cst_44 = arith.constant dense<0.000000e+00> : vector<8x49xf32>
    %48 = tpu.matmul %46, %47, %cst_44 {dimension_numbers = #tpu.dot_dimension_numbers<[1], [0], [0], [1], [0, 0, 1, 1], [], []>} : vector<8x4xf32>, vector<4x49xf32>, vector<8x49xf32> -> vector<8x49xf32>
    %49 = arith.addf %45, %48 : vector<8x49xf32>
    %50 = vector.extract_strided_slice %14 {offsets = [40, 0], sizes = [8, 4], strides = [1, 1]} : vector<72x4xf32> to vector<8x4xf32>
    %51 = vector.extract_strided_slice %30 {offsets = [0, 245], sizes = [4, 49], strides = [1, 1]} : vector<4x441xf32> to vector<4x49xf32>
    %cst_45 = arith.constant dense<0.000000e+00> : vector<8x49xf32>
    %52 = tpu.matmul %50, %51, %cst_45 {dimension_numbers = #tpu.dot_dimension_numbers<[1], [0], [0], [1], [0, 0, 1, 1], [], []>} : vector<8x4xf32>, vector<4x49xf32>, vector<8x49xf32> -> vector<8x49xf32>
    %53 = arith.addf %49, %52 : vector<8x49xf32>
    %54 = vector.extract_strided_slice %14 {offsets = [48, 0], sizes = [8, 4], strides = [1, 1]} : vector<72x4xf32> to vector<8x4xf32>
    %55 = vector.extract_strided_slice %30 {offsets = [0, 294], sizes = [4, 49], strides = [1, 1]} : vector<4x441xf32> to vector<4x49xf32>
    %cst_46 = arith.constant dense<0.000000e+00> : vector<8x49xf32>
    %56 = tpu.matmul %54, %55, %cst_46 {dimension_numbers = #tpu.dot_dimension_numbers<[1], [0], [0], [1], [0, 0, 1, 1], [], []>} : vector<8x4xf32>, vector<4x49xf32>, vector<8x49xf32> -> vector<8x49xf32>
    %57 = arith.addf %53, %56 : vector<8x49xf32>
    %58 = vector.extract_strided_slice %14 {offsets = [56, 0], sizes = [8, 4], strides = [1, 1]} : vector<72x4xf32> to vector<8x4xf32>
    %59 = vector.extract_strided_slice %30 {offsets = [0, 343], sizes = [4, 49], strides = [1, 1]} : vector<4x441xf32> to vector<4x49xf32>
    %cst_47 = arith.constant dense<0.000000e+00> : vector<8x49xf32>
    %60 = tpu.matmul %58, %59, %cst_47 {dimension_numbers = #tpu.dot_dimension_numbers<[1], [0], [0], [1], [0, 0, 1, 1], [], []>} : vector<8x4xf32>, vector<4x49xf32>, vector<8x49xf32> -> vector<8x49xf32>
    %61 = arith.addf %57, %60 : vector<8x49xf32>
    %62 = vector.extract_strided_slice %14 {offsets = [64, 0], sizes = [8, 4], strides = [1, 1]} : vector<72x4xf32> to vector<8x4xf32>
    %63 = vector.extract_strided_slice %30 {offsets = [0, 392], sizes = [4, 49], strides = [1, 1]} : vector<4x441xf32> to vector<4x49xf32>
    %cst_48 = arith.constant dense<0.000000e+00> : vector<8x49xf32>
    %64 = tpu.matmul %62, %63, %cst_48 {dimension_numbers = #tpu.dot_dimension_numbers<[1], [0], [0], [1], [0, 0, 1, 1], [], []>} : vector<8x4xf32>, vector<4x49xf32>, vector<8x49xf32> -> vector<8x49xf32>
    %65 = arith.addf %61, %64 : vector<8x49xf32>
    %66 = vector.broadcast %17 : vector<8x1xf32> to vector<8x49xf32>
    %67 = arith.addf %65, %66 : vector<8x49xf32>
    %cst_49 = arith.constant 0.000000e+00 : f32
    %68 = vector.broadcast %cst_49 : f32 to vector<8x49xf32>
    %69 = arith.maximumf %67, %68 : vector<8x49xf32>
    %cst_50 = arith.constant dense<0.000000e+00> : vector<8x225xf32>
    %70 = tpu.matmul %69, %16, %cst_50 {dimension_numbers = #tpu.dot_dimension_numbers<[1], [0], [0], [1], [0, 0, 1, 1], [], []>} : vector<8x49xf32>, vector<49x225xf32>, vector<8x225xf32> -> vector<8x225xf32>
    %71 = vector.extract_strided_slice %15 {offsets = [0, 0], sizes = [8, 8], strides = [1, 1]} : vector<72x8xf32> to vector<8x8xf32>
    %72 = vector.extract_strided_slice %70 {offsets = [0, 0], sizes = [8, 25], strides = [1, 1]} : vector<8x225xf32> to vector<8x25xf32>
    %cst_51 = arith.constant dense<0.000000e+00> : vector<8x25xf32>
    %73 = tpu.matmul %71, %72, %cst_51 {dimension_numbers = #tpu.dot_dimension_numbers<[1], [0], [0], [1], [0, 0, 1, 1], [], []>} : vector<8x8xf32>, vector<8x25xf32>, vector<8x25xf32> -> vector<8x25xf32>
    %74 = vector.extract_strided_slice %15 {offsets = [8, 0], sizes = [8, 8], strides = [1, 1]} : vector<72x8xf32> to vector<8x8xf32>
    %75 = vector.extract_strided_slice %70 {offsets = [0, 25], sizes = [8, 25], strides = [1, 1]} : vector<8x225xf32> to vector<8x25xf32>
    %cst_52 = arith.constant dense<0.000000e+00> : vector<8x25xf32>
    %76 = tpu.matmul %74, %75, %cst_52 {dimension_numbers = #tpu.dot_dimension_numbers<[1], [0], [0], [1], [0, 0, 1, 1], [], []>} : vector<8x8xf32>, vector<8x25xf32>, vector<8x25xf32> -> vector<8x25xf32>
    %77 = arith.addf %73, %76 : vector<8x25xf32>
    %78 = vector.extract_strided_slice %15 {offsets = [16, 0], sizes = [8, 8], strides = [1, 1]} : vector<72x8xf32> to vector<8x8xf32>
    %79 = vector.extract_strided_slice %70 {offsets = [0, 50], sizes = [8, 25], strides = [1, 1]} : vector<8x225xf32> to vector<8x25xf32>
    %cst_53 = arith.constant dense<0.000000e+00> : vector<8x25xf32>
    %80 = tpu.matmul %78, %79, %cst_53 {dimension_numbers = #tpu.dot_dimension_numbers<[1], [0], [0], [1], [0, 0, 1, 1], [], []>} : vector<8x8xf32>, vector<8x25xf32>, vector<8x25xf32> -> vector<8x25xf32>
    %81 = arith.addf %77, %80 : vector<8x25xf32>
    %82 = vector.extract_strided_slice %15 {offsets = [24, 0], sizes = [8, 8], strides = [1, 1]} : vector<72x8xf32> to vector<8x8xf32>
    %83 = vector.extract_strided_slice %70 {offsets = [0, 75], sizes = [8, 25], strides = [1, 1]} : vector<8x225xf32> to vector<8x25xf32>
    %cst_54 = arith.constant dense<0.000000e+00> : vector<8x25xf32>
    %84 = tpu.matmul %82, %83, %cst_54 {dimension_numbers = #tpu.dot_dimension_numbers<[1], [0], [0], [1], [0, 0, 1, 1], [], []>} : vector<8x8xf32>, vector<8x25xf32>, vector<8x25xf32> -> vector<8x25xf32>
    %85 = arith.addf %81, %84 : vector<8x25xf32>
    %86 = vector.extract_strided_slice %15 {offsets = [32, 0], sizes = [8, 8], strides = [1, 1]} : vector<72x8xf32> to vector<8x8xf32>
    %87 = vector.extract_strided_slice %70 {offsets = [0, 100], sizes = [8, 25], strides = [1, 1]} : vector<8x225xf32> to vector<8x25xf32>
    %cst_55 = arith.constant dense<0.000000e+00> : vector<8x25xf32>
    %88 = tpu.matmul %86, %87, %cst_55 {dimension_numbers = #tpu.dot_dimension_numbers<[1], [0], [0], [1], [0, 0, 1, 1], [], []>} : vector<8x8xf32>, vector<8x25xf32>, vector<8x25xf32> -> vector<8x25xf32>
    %89 = arith.addf %85, %88 : vector<8x25xf32>
    %90 = vector.extract_strided_slice %15 {offsets = [40, 0], sizes = [8, 8], strides = [1, 1]} : vector<72x8xf32> to vector<8x8xf32>
    %91 = vector.extract_strided_slice %70 {offsets = [0, 125], sizes = [8, 25], strides = [1, 1]} : vector<8x225xf32> to vector<8x25xf32>
    %cst_56 = arith.constant dense<0.000000e+00> : vector<8x25xf32>
    %92 = tpu.matmul %90, %91, %cst_56 {dimension_numbers = #tpu.dot_dimension_numbers<[1], [0], [0], [1], [0, 0, 1, 1], [], []>} : vector<8x8xf32>, vector<8x25xf32>, vector<8x25xf32> -> vector<8x25xf32>
    %93 = arith.addf %89, %92 : vector<8x25xf32>
    %94 = vector.extract_strided_slice %15 {offsets = [48, 0], sizes = [8, 8], strides = [1, 1]} : vector<72x8xf32> to vector<8x8xf32>
    %95 = vector.extract_strided_slice %70 {offsets = [0, 150], sizes = [8, 25], strides = [1, 1]} : vector<8x225xf32> to vector<8x25xf32>
    %cst_57 = arith.constant dense<0.000000e+00> : vector<8x25xf32>
    %96 = tpu.matmul %94, %95, %cst_57 {dimension_numbers = #tpu.dot_dimension_numbers<[1], [0], [0], [1], [0, 0, 1, 1], [], []>} : vector<8x8xf32>, vector<8x25xf32>, vector<8x25xf32> -> vector<8x25xf32>
    %97 = arith.addf %93, %96 : vector<8x25xf32>
    %98 = vector.extract_strided_slice %15 {offsets = [56, 0], sizes = [8, 8], strides = [1, 1]} : vector<72x8xf32> to vector<8x8xf32>
    %99 = vector.extract_strided_slice %70 {offsets = [0, 175], sizes = [8, 25], strides = [1, 1]} : vector<8x225xf32> to vector<8x25xf32>
    %cst_58 = arith.constant dense<0.000000e+00> : vector<8x25xf32>
    %100 = tpu.matmul %98, %99, %cst_58 {dimension_numbers = #tpu.dot_dimension_numbers<[1], [0], [0], [1], [0, 0, 1, 1], [], []>} : vector<8x8xf32>, vector<8x25xf32>, vector<8x25xf32> -> vector<8x25xf32>
    %101 = arith.addf %97, %100 : vector<8x25xf32>
    %102 = vector.extract_strided_slice %15 {offsets = [64, 0], sizes = [8, 8], strides = [1, 1]} : vector<72x8xf32> to vector<8x8xf32>
    %103 = vector.extract_strided_slice %70 {offsets = [0, 200], sizes = [8, 25], strides = [1, 1]} : vector<8x225xf32> to vector<8x25xf32>
    %cst_59 = arith.constant dense<0.000000e+00> : vector<8x25xf32>
    %104 = tpu.matmul %102, %103, %cst_59 {dimension_numbers = #tpu.dot_dimension_numbers<[1], [0], [0], [1], [0, 0, 1, 1], [], []>} : vector<8x8xf32>, vector<8x25xf32>, vector<8x25xf32> -> vector<8x25xf32>
    %105 = arith.addf %101, %104 : vector<8x25xf32>
    %106 = vector.broadcast %18 : vector<8x1xf32> to vector<8x25xf32>
    %107 = arith.addf %105, %106 : vector<8x25xf32>
    %cst_60 = arith.constant 0.000000e+00 : f32
    %108 = vector.broadcast %cst_60 : f32 to vector<8x25xf32>
    %109 = arith.maximumf %107, %108 : vector<8x25xf32>
    %110 = vector.extract_strided_slice %109 {offsets = [0, 0], sizes = [1, 25], strides = [1, 1]} : vector<8x25xf32> to vector<1x25xf32>
    %111 = vector.extract_strided_slice %19 {offsets = [0, 0], sizes = [25, 32], strides = [1, 1]} : vector<200x32xf32> to vector<25x32xf32>
    %cst_61 = arith.constant dense<0.000000e+00> : vector<1x32xf32>
    %112 = tpu.matmul %110, %111, %cst_61 {dimension_numbers = #tpu.dot_dimension_numbers<[1], [0], [0], [1], [0, 0, 1, 1], [], []>} : vector<1x25xf32>, vector<25x32xf32>, vector<1x32xf32> -> vector<1x32xf32>
    %113 = arith.addf %20, %112 : vector<1x32xf32>
    %114 = vector.extract_strided_slice %109 {offsets = [1, 0], sizes = [1, 25], strides = [1, 1]} : vector<8x25xf32> to vector<1x25xf32>
    %115 = vector.extract_strided_slice %19 {offsets = [25, 0], sizes = [25, 32], strides = [1, 1]} : vector<200x32xf32> to vector<25x32xf32>
    %cst_62 = arith.constant dense<0.000000e+00> : vector<1x32xf32>
    %116 = tpu.matmul %114, %115, %cst_62 {dimension_numbers = #tpu.dot_dimension_numbers<[1], [0], [0], [1], [0, 0, 1, 1], [], []>} : vector<1x25xf32>, vector<25x32xf32>, vector<1x32xf32> -> vector<1x32xf32>
    %117 = arith.addf %113, %116 : vector<1x32xf32>
    %118 = vector.extract_strided_slice %109 {offsets = [2, 0], sizes = [1, 25], strides = [1, 1]} : vector<8x25xf32> to vector<1x25xf32>
    %119 = vector.extract_strided_slice %19 {offsets = [50, 0], sizes = [25, 32], strides = [1, 1]} : vector<200x32xf32> to vector<25x32xf32>
    %cst_63 = arith.constant dense<0.000000e+00> : vector<1x32xf32>
    %120 = tpu.matmul %118, %119, %cst_63 {dimension_numbers = #tpu.dot_dimension_numbers<[1], [0], [0], [1], [0, 0, 1, 1], [], []>} : vector<1x25xf32>, vector<25x32xf32>, vector<1x32xf32> -> vector<1x32xf32>
    %121 = arith.addf %117, %120 : vector<1x32xf32>
    %122 = vector.extract_strided_slice %109 {offsets = [3, 0], sizes = [1, 25], strides = [1, 1]} : vector<8x25xf32> to vector<1x25xf32>
    %123 = vector.extract_strided_slice %19 {offsets = [75, 0], sizes = [25, 32], strides = [1, 1]} : vector<200x32xf32> to vector<25x32xf32>
    %cst_64 = arith.constant dense<0.000000e+00> : vector<1x32xf32>
    %124 = tpu.matmul %122, %123, %cst_64 {dimension_numbers = #tpu.dot_dimension_numbers<[1], [0], [0], [1], [0, 0, 1, 1], [], []>} : vector<1x25xf32>, vector<25x32xf32>, vector<1x32xf32> -> vector<1x32xf32>
    %125 = arith.addf %121, %124 : vector<1x32xf32>
    %126 = vector.extract_strided_slice %109 {offsets = [4, 0], sizes = [1, 25], strides = [1, 1]} : vector<8x25xf32> to vector<1x25xf32>
    %127 = vector.extract_strided_slice %19 {offsets = [100, 0], sizes = [25, 32], strides = [1, 1]} : vector<200x32xf32> to vector<25x32xf32>
    %cst_65 = arith.constant dense<0.000000e+00> : vector<1x32xf32>
    %128 = tpu.matmul %126, %127, %cst_65 {dimension_numbers = #tpu.dot_dimension_numbers<[1], [0], [0], [1], [0, 0, 1, 1], [], []>} : vector<1x25xf32>, vector<25x32xf32>, vector<1x32xf32> -> vector<1x32xf32>
    %129 = arith.addf %125, %128 : vector<1x32xf32>
    %130 = vector.extract_strided_slice %109 {offsets = [5, 0], sizes = [1, 25], strides = [1, 1]} : vector<8x25xf32> to vector<1x25xf32>
    %131 = vector.extract_strided_slice %19 {offsets = [125, 0], sizes = [25, 32], strides = [1, 1]} : vector<200x32xf32> to vector<25x32xf32>
    %cst_66 = arith.constant dense<0.000000e+00> : vector<1x32xf32>
    %132 = tpu.matmul %130, %131, %cst_66 {dimension_numbers = #tpu.dot_dimension_numbers<[1], [0], [0], [1], [0, 0, 1, 1], [], []>} : vector<1x25xf32>, vector<25x32xf32>, vector<1x32xf32> -> vector<1x32xf32>
    %133 = arith.addf %129, %132 : vector<1x32xf32>
    %134 = vector.extract_strided_slice %109 {offsets = [6, 0], sizes = [1, 25], strides = [1, 1]} : vector<8x25xf32> to vector<1x25xf32>
    %135 = vector.extract_strided_slice %19 {offsets = [150, 0], sizes = [25, 32], strides = [1, 1]} : vector<200x32xf32> to vector<25x32xf32>
    %cst_67 = arith.constant dense<0.000000e+00> : vector<1x32xf32>
    %136 = tpu.matmul %134, %135, %cst_67 {dimension_numbers = #tpu.dot_dimension_numbers<[1], [0], [0], [1], [0, 0, 1, 1], [], []>} : vector<1x25xf32>, vector<25x32xf32>, vector<1x32xf32> -> vector<1x32xf32>
    %137 = arith.addf %133, %136 : vector<1x32xf32>
    %138 = vector.extract_strided_slice %109 {offsets = [7, 0], sizes = [1, 25], strides = [1, 1]} : vector<8x25xf32> to vector<1x25xf32>
    %139 = vector.extract_strided_slice %19 {offsets = [175, 0], sizes = [25, 32], strides = [1, 1]} : vector<200x32xf32> to vector<25x32xf32>
    %cst_68 = arith.constant dense<0.000000e+00> : vector<1x32xf32>
    %140 = tpu.matmul %138, %139, %cst_68 {dimension_numbers = #tpu.dot_dimension_numbers<[1], [0], [0], [1], [0, 0, 1, 1], [], []>} : vector<1x25xf32>, vector<25x32xf32>, vector<1x32xf32> -> vector<1x32xf32>
    %141 = arith.addf %137, %140 : vector<1x32xf32>
    %cst_69 = arith.constant dense<0.000000e+00> : vector<1xf32>
    %142 = vector.multi_reduction <add>, %141, %cst_69 [1] : vector<1x32xf32> to vector<1xf32>
    %143 = vector.shape_cast %142 : vector<1xf32> to vector<1x1xf32>
    %cst_70 = arith.constant 3.200000e+01 : f32
    %144 = vector.broadcast %cst_70 : f32 to vector<1x1xf32>
    %145 = arith.divf %143, %144 : vector<1x1xf32>
    %146 = vector.broadcast %145 : vector<1x1xf32> to vector<1x32xf32>
    %147 = arith.subf %141, %146 : vector<1x32xf32>
    %148 = vector.broadcast %145 : vector<1x1xf32> to vector<1x32xf32>
    %149 = arith.subf %141, %148 : vector<1x32xf32>
    %150 = arith.mulf %147, %149 : vector<1x32xf32>
    %cst_71 = arith.constant dense<0.000000e+00> : vector<1xf32>
    %151 = vector.multi_reduction <add>, %150, %cst_71 [1] : vector<1x32xf32> to vector<1xf32>
    %152 = vector.shape_cast %151 : vector<1xf32> to vector<1x1xf32>
    %cst_72 = arith.constant 3.200000e+01 : f32
    %153 = vector.broadcast %cst_72 : f32 to vector<1x1xf32>
    %154 = arith.divf %152, %153 : vector<1x1xf32>
    %155 = vector.broadcast %145 : vector<1x1xf32> to vector<1x32xf32>
    %156 = arith.subf %141, %155 : vector<1x32xf32>
    %cst_73 = arith.constant 9.99999974E-6 : f32
    %157 = vector.broadcast %cst_73 : f32 to vector<1x1xf32>
    %158 = arith.addf %154, %157 : vector<1x1xf32>
    %159 = math.rsqrt %158 : vector<1x1xf32>
    %160 = vector.broadcast %159 : vector<1x1xf32> to vector<1x32xf32>
    %161 = arith.mulf %156, %160 : vector<1x32xf32>
    %162 = arith.mulf %161, %21 : vector<1x32xf32>
    %163 = arith.addf %162, %22 : vector<1x32xf32>
    %cst_74 = arith.constant dense<0.000000e+00> : vector<1x32xf32>
    %164 = tpu.matmul %163, %23, %cst_74 {dimension_numbers = #tpu.dot_dimension_numbers<[1], [0], [0], [1], [0, 0, 1, 1], [], []>} : vector<1x32xf32>, vector<32x32xf32>, vector<1x32xf32> -> vector<1x32xf32>
    %165 = arith.addf %164, %24 : vector<1x32xf32>
    %cst_75 = arith.constant 0.000000e+00 : f32
    %166 = vector.broadcast %cst_75 : f32 to vector<1x32xf32>
    %167 = arith.maximumf %165, %166 : vector<1x32xf32>
    %cst_76 = arith.constant dense<0.000000e+00> : vector<1x32xf32>
    %168 = tpu.matmul %167, %25, %cst_76 {dimension_numbers = #tpu.dot_dimension_numbers<[1], [0], [0], [1], [0, 0, 1, 1], [], []>} : vector<1x32xf32>, vector<32x32xf32>, vector<1x32xf32> -> vector<1x32xf32>
    %169 = arith.addf %168, %26 : vector<1x32xf32>
    %cst_77 = arith.constant 0.000000e+00 : f32
    %170 = vector.broadcast %cst_77 : f32 to vector<1x32xf32>
    %171 = arith.maximumf %169, %170 : vector<1x32xf32>
    %cst_78 = arith.constant dense<0.000000e+00> : vector<1x8xf32>
    %172 = tpu.matmul %171, %27, %cst_78 {dimension_numbers = #tpu.dot_dimension_numbers<[1], [0], [0], [1], [0, 0, 1, 1], [], []>} : vector<1x32xf32>, vector<32x8xf32>, vector<1x8xf32> -> vector<1x8xf32>
    %173 = arith.addf %172, %28 : vector<1x8xf32>
    %174 = vector.extract_strided_slice %173 {offsets = [0, 0], sizes = [1, 4], strides = [1, 1]} : vector<1x8xf32> to vector<1x4xf32>
    %175 = vector.extract_strided_slice %173 {offsets = [0, 4], sizes = [1, 4], strides = [1, 1]} : vector<1x8xf32> to vector<1x4xf32>
    %176 = math.tanh %175 : vector<1x4xf32>
    %cst_79 = arith.constant 1.000000e+00 : f32
    %177 = vector.broadcast %cst_79 : f32 to vector<1x4xf32>
    %178 = arith.addf %176, %177 : vector<1x4xf32>
    %cst_80 = arith.constant 6.000000e+00 : f32
    %179 = vector.broadcast %cst_80 : f32 to vector<1x4xf32>
    %180 = arith.mulf %179, %178 : vector<1x4xf32>
    %cst_81 = arith.constant -1.000000e+01 : f32
    %181 = vector.broadcast %cst_81 : f32 to vector<1x4xf32>
    %182 = arith.addf %181, %180 : vector<1x4xf32>
    %183 = math.exp %182 : vector<1x4xf32>
    %184 = vector.extract_strided_slice %29 {offsets = [0, 0], sizes = [1, 4], strides = [1, 1]} : vector<2x4xf32> to vector<1x4xf32>
    %185 = arith.mulf %184, %183 : vector<1x4xf32>
    %186 = arith.addf %174, %185 : vector<1x4xf32>
    %cst_82 = arith.constant -5.000000e-01 : f32
    %187 = vector.broadcast %cst_82 : f32 to vector<1x4xf32>
    %188 = arith.mulf %187, %184 : vector<1x4xf32>
    %189 = arith.mulf %188, %184 : vector<1x4xf32>
    %190 = arith.subf %189, %182 : vector<1x4xf32>
    %cst_83 = arith.constant dense<0.000000e+00> : vector<1xf32>
    %191 = vector.multi_reduction <add>, %190, %cst_83 [1] : vector<1x4xf32> to vector<1xf32>
    %192 = vector.shape_cast %191 : vector<1xf32> to vector<1x1xf32>
    %cst_84 = arith.constant 3.67575407 : f32
    %193 = vector.broadcast %cst_84 : f32 to vector<1x1xf32>
    %194 = arith.subf %192, %193 : vector<1x1xf32>
    %195 = math.tanh %174 : vector<1x4xf32>
    %196 = math.tanh %186 : vector<1x4xf32>
    %197 = arith.mulf %196, %196 : vector<1x4xf32>
    %cst_85 = arith.constant 1.000000e+00 : f32
    %198 = vector.broadcast %cst_85 : f32 to vector<1x4xf32>
    %199 = arith.subf %198, %197 : vector<1x4xf32>
    %cst_86 = arith.constant 0.000000e+00 : f32
    %200 = vector.broadcast %cst_86 : f32 to vector<1x4xf32>
    %201 = arith.maximumf %199, %200 : vector<1x4xf32>
    %cst_87 = arith.constant 9.99999997E-7 : f32
    %202 = vector.broadcast %cst_87 : f32 to vector<1x4xf32>
    %203 = arith.addf %201, %202 : vector<1x4xf32>
    %204 = math.log %203 : vector<1x4xf32>
    %cst_88 = arith.constant dense<0.000000e+00> : vector<1xf32>
    %205 = vector.multi_reduction <add>, %204, %cst_88 [1] : vector<1x4xf32> to vector<1xf32>
    %206 = vector.shape_cast %205 : vector<1xf32> to vector<1x1xf32>
    %207 = arith.subf %194, %206 : vector<1x1xf32>
    %cst_89 = arith.constant 0.000000e+00 : f32
    %208 = vector.broadcast %cst_89 : f32 to vector<1x115xf32>
    %209 = tpu.concatenate %195, %196, %182, %207, %208 in 1 : vector<1x4xf32>, vector<1x4xf32>, vector<1x4xf32>, vector<1x1xf32>, vector<1x115xf32> -> vector<1x128xf32>
    %c0_90 = arith.constant 0 : index
    %c0_91 = arith.constant 0 : index
    %210 = vector.load %arg18[%c0_90, %c0_91] : memref<2x128xf32, #tpu.memory_space<vmem>>, vector<1x128xf32>
    tpu.vector_store %arg18[%c0_90, %c0_91], %209 {strides = array<i32>} : memref<2x128xf32, #tpu.memory_space<vmem>>, vector<1x128xf32>,
    %211 = vector.extract_strided_slice %13 {offsets = [4, 0], sizes = [4, 441], strides = [1, 1]} : vector<8x441xf32> to vector<4x441xf32>
    %212 = vector.extract_strided_slice %14 {offsets = [0, 0], sizes = [8, 4], strides = [1, 1]} : vector<72x4xf32> to vector<8x4xf32>
    %213 = vector.extract_strided_slice %211 {offsets = [0, 0], sizes = [4, 49], strides = [1, 1]} : vector<4x441xf32> to vector<4x49xf32>
    %cst_92 = arith.constant dense<0.000000e+00> : vector<8x49xf32>
    %214 = tpu.matmul %212, %213, %cst_92 {dimension_numbers = #tpu.dot_dimension_numbers<[1], [0], [0], [1], [0, 0, 1, 1], [], []>} : vector<8x4xf32>, vector<4x49xf32>, vector<8x49xf32> -> vector<8x49xf32>
    %215 = vector.extract_strided_slice %14 {offsets = [8, 0], sizes = [8, 4], strides = [1, 1]} : vector<72x4xf32> to vector<8x4xf32>
    %216 = vector.extract_strided_slice %211 {offsets = [0, 49], sizes = [4, 49], strides = [1, 1]} : vector<4x441xf32> to vector<4x49xf32>
    %cst_93 = arith.constant dense<0.000000e+00> : vector<8x49xf32>
    %217 = tpu.matmul %215, %216, %cst_93 {dimension_numbers = #tpu.dot_dimension_numbers<[1], [0], [0], [1], [0, 0, 1, 1], [], []>} : vector<8x4xf32>, vector<4x49xf32>, vector<8x49xf32> -> vector<8x49xf32>
    %218 = arith.addf %214, %217 : vector<8x49xf32>
    %219 = vector.extract_strided_slice %14 {offsets = [16, 0], sizes = [8, 4], strides = [1, 1]} : vector<72x4xf32> to vector<8x4xf32>
    %220 = vector.extract_strided_slice %211 {offsets = [0, 98], sizes = [4, 49], strides = [1, 1]} : vector<4x441xf32> to vector<4x49xf32>
    %cst_94 = arith.constant dense<0.000000e+00> : vector<8x49xf32>
    %221 = tpu.matmul %219, %220, %cst_94 {dimension_numbers = #tpu.dot_dimension_numbers<[1], [0], [0], [1], [0, 0, 1, 1], [], []>} : vector<8x4xf32>, vector<4x49xf32>, vector<8x49xf32> -> vector<8x49xf32>
    %222 = arith.addf %218, %221 : vector<8x49xf32>
    %223 = vector.extract_strided_slice %14 {offsets = [24, 0], sizes = [8, 4], strides = [1, 1]} : vector<72x4xf32> to vector<8x4xf32>
    %224 = vector.extract_strided_slice %211 {offsets = [0, 147], sizes = [4, 49], strides = [1, 1]} : vector<4x441xf32> to vector<4x49xf32>
    %cst_95 = arith.constant dense<0.000000e+00> : vector<8x49xf32>
    %225 = tpu.matmul %223, %224, %cst_95 {dimension_numbers = #tpu.dot_dimension_numbers<[1], [0], [0], [1], [0, 0, 1, 1], [], []>} : vector<8x4xf32>, vector<4x49xf32>, vector<8x49xf32> -> vector<8x49xf32>
    %226 = arith.addf %222, %225 : vector<8x49xf32>
    %227 = vector.extract_strided_slice %14 {offsets = [32, 0], sizes = [8, 4], strides = [1, 1]} : vector<72x4xf32> to vector<8x4xf32>
    %228 = vector.extract_strided_slice %211 {offsets = [0, 196], sizes = [4, 49], strides = [1, 1]} : vector<4x441xf32> to vector<4x49xf32>
    %cst_96 = arith.constant dense<0.000000e+00> : vector<8x49xf32>
    %229 = tpu.matmul %227, %228, %cst_96 {dimension_numbers = #tpu.dot_dimension_numbers<[1], [0], [0], [1], [0, 0, 1, 1], [], []>} : vector<8x4xf32>, vector<4x49xf32>, vector<8x49xf32> -> vector<8x49xf32>
    %230 = arith.addf %226, %229 : vector<8x49xf32>
    %231 = vector.extract_strided_slice %14 {offsets = [40, 0], sizes = [8, 4], strides = [1, 1]} : vector<72x4xf32> to vector<8x4xf32>
    %232 = vector.extract_strided_slice %211 {offsets = [0, 245], sizes = [4, 49], strides = [1, 1]} : vector<4x441xf32> to vector<4x49xf32>
    %cst_97 = arith.constant dense<0.000000e+00> : vector<8x49xf32>
    %233 = tpu.matmul %231, %232, %cst_97 {dimension_numbers = #tpu.dot_dimension_numbers<[1], [0], [0], [1], [0, 0, 1, 1], [], []>} : vector<8x4xf32>, vector<4x49xf32>, vector<8x49xf32> -> vector<8x49xf32>
    %234 = arith.addf %230, %233 : vector<8x49xf32>
    %235 = vector.extract_strided_slice %14 {offsets = [48, 0], sizes = [8, 4], strides = [1, 1]} : vector<72x4xf32> to vector<8x4xf32>
    %236 = vector.extract_strided_slice %211 {offsets = [0, 294], sizes = [4, 49], strides = [1, 1]} : vector<4x441xf32> to vector<4x49xf32>
    %cst_98 = arith.constant dense<0.000000e+00> : vector<8x49xf32>
    %237 = tpu.matmul %235, %236, %cst_98 {dimension_numbers = #tpu.dot_dimension_numbers<[1], [0], [0], [1], [0, 0, 1, 1], [], []>} : vector<8x4xf32>, vector<4x49xf32>, vector<8x49xf32> -> vector<8x49xf32>
    %238 = arith.addf %234, %237 : vector<8x49xf32>
    %239 = vector.extract_strided_slice %14 {offsets = [56, 0], sizes = [8, 4], strides = [1, 1]} : vector<72x4xf32> to vector<8x4xf32>
    %240 = vector.extract_strided_slice %211 {offsets = [0, 343], sizes = [4, 49], strides = [1, 1]} : vector<4x441xf32> to vector<4x49xf32>
    %cst_99 = arith.constant dense<0.000000e+00> : vector<8x49xf32>
    %241 = tpu.matmul %239, %240, %cst_99 {dimension_numbers = #tpu.dot_dimension_numbers<[1], [0], [0], [1], [0, 0, 1, 1], [], []>} : vector<8x4xf32>, vector<4x49xf32>, vector<8x49xf32> -> vector<8x49xf32>
    %242 = arith.addf %238, %241 : vector<8x49xf32>
    %243 = vector.extract_strided_slice %14 {offsets = [64, 0], sizes = [8, 4], strides = [1, 1]} : vector<72x4xf32> to vector<8x4xf32>
    %244 = vector.extract_strided_slice %211 {offsets = [0, 392], sizes = [4, 49], strides = [1, 1]} : vector<4x441xf32> to vector<4x49xf32>
    %cst_100 = arith.constant dense<0.000000e+00> : vector<8x49xf32>
    %245 = tpu.matmul %243, %244, %cst_100 {dimension_numbers = #tpu.dot_dimension_numbers<[1], [0], [0], [1], [0, 0, 1, 1], [], []>} : vector<8x4xf32>, vector<4x49xf32>, vector<8x49xf32> -> vector<8x49xf32>
    %246 = arith.addf %242, %245 : vector<8x49xf32>
    %247 = vector.broadcast %17 : vector<8x1xf32> to vector<8x49xf32>
    %248 = arith.addf %246, %247 : vector<8x49xf32>
    %cst_101 = arith.constant 0.000000e+00 : f32
    %249 = vector.broadcast %cst_101 : f32 to vector<8x49xf32>
    %250 = arith.maximumf %248, %249 : vector<8x49xf32>
    %cst_102 = arith.constant dense<0.000000e+00> : vector<8x225xf32>
    %251 = tpu.matmul %250, %16, %cst_102 {dimension_numbers = #tpu.dot_dimension_numbers<[1], [0], [0], [1], [0, 0, 1, 1], [], []>} : vector<8x49xf32>, vector<49x225xf32>, vector<8x225xf32> -> vector<8x225xf32>
    %252 = vector.extract_strided_slice %15 {offsets = [0, 0], sizes = [8, 8], strides = [1, 1]} : vector<72x8xf32> to vector<8x8xf32>
    %253 = vector.extract_strided_slice %251 {offsets = [0, 0], sizes = [8, 25], strides = [1, 1]} : vector<8x225xf32> to vector<8x25xf32>
    %cst_103 = arith.constant dense<0.000000e+00> : vector<8x25xf32>
    %254 = tpu.matmul %252, %253, %cst_103 {dimension_numbers = #tpu.dot_dimension_numbers<[1], [0], [0], [1], [0, 0, 1, 1], [], []>} : vector<8x8xf32>, vector<8x25xf32>, vector<8x25xf32> -> vector<8x25xf32>
    %255 = vector.extract_strided_slice %15 {offsets = [8, 0], sizes = [8, 8], strides = [1, 1]} : vector<72x8xf32> to vector<8x8xf32>
    %256 = vector.extract_strided_slice %251 {offsets = [0, 25], sizes = [8, 25], strides = [1, 1]} : vector<8x225xf32> to vector<8x25xf32>
    %cst_104 = arith.constant dense<0.000000e+00> : vector<8x25xf32>
    %257 = tpu.matmul %255, %256, %cst_104 {dimension_numbers = #tpu.dot_dimension_numbers<[1], [0], [0], [1], [0, 0, 1, 1], [], []>} : vector<8x8xf32>, vector<8x25xf32>, vector<8x25xf32> -> vector<8x25xf32>
    %258 = arith.addf %254, %257 : vector<8x25xf32>
    %259 = vector.extract_strided_slice %15 {offsets = [16, 0], sizes = [8, 8], strides = [1, 1]} : vector<72x8xf32> to vector<8x8xf32>
    %260 = vector.extract_strided_slice %251 {offsets = [0, 50], sizes = [8, 25], strides = [1, 1]} : vector<8x225xf32> to vector<8x25xf32>
    %cst_105 = arith.constant dense<0.000000e+00> : vector<8x25xf32>
    %261 = tpu.matmul %259, %260, %cst_105 {dimension_numbers = #tpu.dot_dimension_numbers<[1], [0], [0], [1], [0, 0, 1, 1], [], []>} : vector<8x8xf32>, vector<8x25xf32>, vector<8x25xf32> -> vector<8x25xf32>
    %262 = arith.addf %258, %261 : vector<8x25xf32>
    %263 = vector.extract_strided_slice %15 {offsets = [24, 0], sizes = [8, 8], strides = [1, 1]} : vector<72x8xf32> to vector<8x8xf32>
    %264 = vector.extract_strided_slice %251 {offsets = [0, 75], sizes = [8, 25], strides = [1, 1]} : vector<8x225xf32> to vector<8x25xf32>
    %cst_106 = arith.constant dense<0.000000e+00> : vector<8x25xf32>
    %265 = tpu.matmul %263, %264, %cst_106 {dimension_numbers = #tpu.dot_dimension_numbers<[1], [0], [0], [1], [0, 0, 1, 1], [], []>} : vector<8x8xf32>, vector<8x25xf32>, vector<8x25xf32> -> vector<8x25xf32>
    %266 = arith.addf %262, %265 : vector<8x25xf32>
    %267 = vector.extract_strided_slice %15 {offsets = [32, 0], sizes = [8, 8], strides = [1, 1]} : vector<72x8xf32> to vector<8x8xf32>
    %268 = vector.extract_strided_slice %251 {offsets = [0, 100], sizes = [8, 25], strides = [1, 1]} : vector<8x225xf32> to vector<8x25xf32>
    %cst_107 = arith.constant dense<0.000000e+00> : vector<8x25xf32>
    %269 = tpu.matmul %267, %268, %cst_107 {dimension_numbers = #tpu.dot_dimension_numbers<[1], [0], [0], [1], [0, 0, 1, 1], [], []>} : vector<8x8xf32>, vector<8x25xf32>, vector<8x25xf32> -> vector<8x25xf32>
    %270 = arith.addf %266, %269 : vector<8x25xf32>
    %271 = vector.extract_strided_slice %15 {offsets = [40, 0], sizes = [8, 8], strides = [1, 1]} : vector<72x8xf32> to vector<8x8xf32>
    %272 = vector.extract_strided_slice %251 {offsets = [0, 125], sizes = [8, 25], strides = [1, 1]} : vector<8x225xf32> to vector<8x25xf32>
    %cst_108 = arith.constant dense<0.000000e+00> : vector<8x25xf32>
    %273 = tpu.matmul %271, %272, %cst_108 {dimension_numbers = #tpu.dot_dimension_numbers<[1], [0], [0], [1], [0, 0, 1, 1], [], []>} : vector<8x8xf32>, vector<8x25xf32>, vector<8x25xf32> -> vector<8x25xf32>
    %274 = arith.addf %270, %273 : vector<8x25xf32>
    %275 = vector.extract_strided_slice %15 {offsets = [48, 0], sizes = [8, 8], strides = [1, 1]} : vector<72x8xf32> to vector<8x8xf32>
    %276 = vector.extract_strided_slice %251 {offsets = [0, 150], sizes = [8, 25], strides = [1, 1]} : vector<8x225xf32> to vector<8x25xf32>
    %cst_109 = arith.constant dense<0.000000e+00> : vector<8x25xf32>
    %277 = tpu.matmul %275, %276, %cst_109 {dimension_numbers = #tpu.dot_dimension_numbers<[1], [0], [0], [1], [0, 0, 1, 1], [], []>} : vector<8x8xf32>, vector<8x25xf32>, vector<8x25xf32> -> vector<8x25xf32>
    %278 = arith.addf %274, %277 : vector<8x25xf32>
    %279 = vector.extract_strided_slice %15 {offsets = [56, 0], sizes = [8, 8], strides = [1, 1]} : vector<72x8xf32> to vector<8x8xf32>
    %280 = vector.extract_strided_slice %251 {offsets = [0, 175], sizes = [8, 25], strides = [1, 1]} : vector<8x225xf32> to vector<8x25xf32>
    %cst_110 = arith.constant dense<0.000000e+00> : vector<8x25xf32>
    %281 = tpu.matmul %279, %280, %cst_110 {dimension_numbers = #tpu.dot_dimension_numbers<[1], [0], [0], [1], [0, 0, 1, 1], [], []>} : vector<8x8xf32>, vector<8x25xf32>, vector<8x25xf32> -> vector<8x25xf32>
    %282 = arith.addf %278, %281 : vector<8x25xf32>
    %283 = vector.extract_strided_slice %15 {offsets = [64, 0], sizes = [8, 8], strides = [1, 1]} : vector<72x8xf32> to vector<8x8xf32>
    %284 = vector.extract_strided_slice %251 {offsets = [0, 200], sizes = [8, 25], strides = [1, 1]} : vector<8x225xf32> to vector<8x25xf32>
    %cst_111 = arith.constant dense<0.000000e+00> : vector<8x25xf32>
    %285 = tpu.matmul %283, %284, %cst_111 {dimension_numbers = #tpu.dot_dimension_numbers<[1], [0], [0], [1], [0, 0, 1, 1], [], []>} : vector<8x8xf32>, vector<8x25xf32>, vector<8x25xf32> -> vector<8x25xf32>
    %286 = arith.addf %282, %285 : vector<8x25xf32>
    %287 = vector.broadcast %18 : vector<8x1xf32> to vector<8x25xf32>
    %288 = arith.addf %286, %287 : vector<8x25xf32>
    %cst_112 = arith.constant 0.000000e+00 : f32
    %289 = vector.broadcast %cst_112 : f32 to vector<8x25xf32>
    %290 = arith.maximumf %288, %289 : vector<8x25xf32>
    %291 = vector.extract_strided_slice %290 {offsets = [0, 0], sizes = [1, 25], strides = [1, 1]} : vector<8x25xf32> to vector<1x25xf32>
    %292 = vector.extract_strided_slice %19 {offsets = [0, 0], sizes = [25, 32], strides = [1, 1]} : vector<200x32xf32> to vector<25x32xf32>
    %cst_113 = arith.constant dense<0.000000e+00> : vector<1x32xf32>
    %293 = tpu.matmul %291, %292, %cst_113 {dimension_numbers = #tpu.dot_dimension_numbers<[1], [0], [0], [1], [0, 0, 1, 1], [], []>} : vector<1x25xf32>, vector<25x32xf32>, vector<1x32xf32> -> vector<1x32xf32>
    %294 = arith.addf %20, %293 : vector<1x32xf32>
    %295 = vector.extract_strided_slice %290 {offsets = [1, 0], sizes = [1, 25], strides = [1, 1]} : vector<8x25xf32> to vector<1x25xf32>
    %296 = vector.extract_strided_slice %19 {offsets = [25, 0], sizes = [25, 32], strides = [1, 1]} : vector<200x32xf32> to vector<25x32xf32>
    %cst_114 = arith.constant dense<0.000000e+00> : vector<1x32xf32>
    %297 = tpu.matmul %295, %296, %cst_114 {dimension_numbers = #tpu.dot_dimension_numbers<[1], [0], [0], [1], [0, 0, 1, 1], [], []>} : vector<1x25xf32>, vector<25x32xf32>, vector<1x32xf32> -> vector<1x32xf32>
    %298 = arith.addf %294, %297 : vector<1x32xf32>
    %299 = vector.extract_strided_slice %290 {offsets = [2, 0], sizes = [1, 25], strides = [1, 1]} : vector<8x25xf32> to vector<1x25xf32>
    %300 = vector.extract_strided_slice %19 {offsets = [50, 0], sizes = [25, 32], strides = [1, 1]} : vector<200x32xf32> to vector<25x32xf32>
    %cst_115 = arith.constant dense<0.000000e+00> : vector<1x32xf32>
    %301 = tpu.matmul %299, %300, %cst_115 {dimension_numbers = #tpu.dot_dimension_numbers<[1], [0], [0], [1], [0, 0, 1, 1], [], []>} : vector<1x25xf32>, vector<25x32xf32>, vector<1x32xf32> -> vector<1x32xf32>
    %302 = arith.addf %298, %301 : vector<1x32xf32>
    %303 = vector.extract_strided_slice %290 {offsets = [3, 0], sizes = [1, 25], strides = [1, 1]} : vector<8x25xf32> to vector<1x25xf32>
    %304 = vector.extract_strided_slice %19 {offsets = [75, 0], sizes = [25, 32], strides = [1, 1]} : vector<200x32xf32> to vector<25x32xf32>
    %cst_116 = arith.constant dense<0.000000e+00> : vector<1x32xf32>
    %305 = tpu.matmul %303, %304, %cst_116 {dimension_numbers = #tpu.dot_dimension_numbers<[1], [0], [0], [1], [0, 0, 1, 1], [], []>} : vector<1x25xf32>, vector<25x32xf32>, vector<1x32xf32> -> vector<1x32xf32>
    %306 = arith.addf %302, %305 : vector<1x32xf32>
    %307 = vector.extract_strided_slice %290 {offsets = [4, 0], sizes = [1, 25], strides = [1, 1]} : vector<8x25xf32> to vector<1x25xf32>
    %308 = vector.extract_strided_slice %19 {offsets = [100, 0], sizes = [25, 32], strides = [1, 1]} : vector<200x32xf32> to vector<25x32xf32>
    %cst_117 = arith.constant dense<0.000000e+00> : vector<1x32xf32>
    %309 = tpu.matmul %307, %308, %cst_117 {dimension_numbers = #tpu.dot_dimension_numbers<[1], [0], [0], [1], [0, 0, 1, 1], [], []>} : vector<1x25xf32>, vector<25x32xf32>, vector<1x32xf32> -> vector<1x32xf32>
    %310 = arith.addf %306, %309 : vector<1x32xf32>
    %311 = vector.extract_strided_slice %290 {offsets = [5, 0], sizes = [1, 25], strides = [1, 1]} : vector<8x25xf32> to vector<1x25xf32>
    %312 = vector.extract_strided_slice %19 {offsets = [125, 0], sizes = [25, 32], strides = [1, 1]} : vector<200x32xf32> to vector<25x32xf32>
    %cst_118 = arith.constant dense<0.000000e+00> : vector<1x32xf32>
    %313 = tpu.matmul %311, %312, %cst_118 {dimension_numbers = #tpu.dot_dimension_numbers<[1], [0], [0], [1], [0, 0, 1, 1], [], []>} : vector<1x25xf32>, vector<25x32xf32>, vector<1x32xf32> -> vector<1x32xf32>
    %314 = arith.addf %310, %313 : vector<1x32xf32>
    %315 = vector.extract_strided_slice %290 {offsets = [6, 0], sizes = [1, 25], strides = [1, 1]} : vector<8x25xf32> to vector<1x25xf32>
    %316 = vector.extract_strided_slice %19 {offsets = [150, 0], sizes = [25, 32], strides = [1, 1]} : vector<200x32xf32> to vector<25x32xf32>
    %cst_119 = arith.constant dense<0.000000e+00> : vector<1x32xf32>
    %317 = tpu.matmul %315, %316, %cst_119 {dimension_numbers = #tpu.dot_dimension_numbers<[1], [0], [0], [1], [0, 0, 1, 1], [], []>} : vector<1x25xf32>, vector<25x32xf32>, vector<1x32xf32> -> vector<1x32xf32>
    %318 = arith.addf %314, %317 : vector<1x32xf32>
    %319 = vector.extract_strided_slice %290 {offsets = [7, 0], sizes = [1, 25], strides = [1, 1]} : vector<8x25xf32> to vector<1x25xf32>
    %320 = vector.extract_strided_slice %19 {offsets = [175, 0], sizes = [25, 32], strides = [1, 1]} : vector<200x32xf32> to vector<25x32xf32>
    %cst_120 = arith.constant dense<0.000000e+00> : vector<1x32xf32>
    %321 = tpu.matmul %319, %320, %cst_120 {dimension_numbers = #tpu.dot_dimension_numbers<[1], [0], [0], [1], [0, 0, 1, 1], [], []>} : vector<1x25xf32>, vector<25x32xf32>, vector<1x32xf32> -> vector<1x32xf32>
    %322 = arith.addf %318, %321 : vector<1x32xf32>
    %cst_121 = arith.constant dense<0.000000e+00> : vector<1xf32>
    %323 = vector.multi_reduction <add>, %322, %cst_121 [1] : vector<1x32xf32> to vector<1xf32>
    %324 = vector.shape_cast %323 : vector<1xf32> to vector<1x1xf32>
    %cst_122 = arith.constant 3.200000e+01 : f32
    %325 = vector.broadcast %cst_122 : f32 to vector<1x1xf32>
    %326 = arith.divf %324, %325 : vector<1x1xf32>
    %327 = vector.broadcast %326 : vector<1x1xf32> to vector<1x32xf32>
    %328 = arith.subf %322, %327 : vector<1x32xf32>
    %329 = vector.broadcast %326 : vector<1x1xf32> to vector<1x32xf32>
    %330 = arith.subf %322, %329 : vector<1x32xf32>
    %331 = arith.mulf %328, %330 : vector<1x32xf32>
    %cst_123 = arith.constant dense<0.000000e+00> : vector<1xf32>
    %332 = vector.multi_reduction <add>, %331, %cst_123 [1] : vector<1x32xf32> to vector<1xf32>
    %333 = vector.shape_cast %332 : vector<1xf32> to vector<1x1xf32>
    %cst_124 = arith.constant 3.200000e+01 : f32
    %334 = vector.broadcast %cst_124 : f32 to vector<1x1xf32>
    %335 = arith.divf %333, %334 : vector<1x1xf32>
    %336 = vector.broadcast %326 : vector<1x1xf32> to vector<1x32xf32>
    %337 = arith.subf %322, %336 : vector<1x32xf32>
    %cst_125 = arith.constant 9.99999974E-6 : f32
    %338 = vector.broadcast %cst_125 : f32 to vector<1x1xf32>
    %339 = arith.addf %335, %338 : vector<1x1xf32>
    %340 = math.rsqrt %339 : vector<1x1xf32>
    %341 = vector.broadcast %340 : vector<1x1xf32> to vector<1x32xf32>
    %342 = arith.mulf %337, %341 : vector<1x32xf32>
    %343 = arith.mulf %342, %21 : vector<1x32xf32>
    %344 = arith.addf %343, %22 : vector<1x32xf32>
    %cst_126 = arith.constant dense<0.000000e+00> : vector<1x32xf32>
    %345 = tpu.matmul %344, %23, %cst_126 {dimension_numbers = #tpu.dot_dimension_numbers<[1], [0], [0], [1], [0, 0, 1, 1], [], []>} : vector<1x32xf32>, vector<32x32xf32>, vector<1x32xf32> -> vector<1x32xf32>
    %346 = arith.addf %345, %24 : vector<1x32xf32>
    %cst_127 = arith.constant 0.000000e+00 : f32
    %347 = vector.broadcast %cst_127 : f32 to vector<1x32xf32>
    %348 = arith.maximumf %346, %347 : vector<1x32xf32>
    %cst_128 = arith.constant dense<0.000000e+00> : vector<1x32xf32>
    %349 = tpu.matmul %348, %25, %cst_128 {dimension_numbers = #tpu.dot_dimension_numbers<[1], [0], [0], [1], [0, 0, 1, 1], [], []>} : vector<1x32xf32>, vector<32x32xf32>, vector<1x32xf32> -> vector<1x32xf32>
    %350 = arith.addf %349, %26 : vector<1x32xf32>
    %cst_129 = arith.constant 0.000000e+00 : f32
    %351 = vector.broadcast %cst_129 : f32 to vector<1x32xf32>
    %352 = arith.maximumf %350, %351 : vector<1x32xf32>
    %cst_130 = arith.constant dense<0.000000e+00> : vector<1x8xf32>
    %353 = tpu.matmul %352, %27, %cst_130 {dimension_numbers = #tpu.dot_dimension_numbers<[1], [0], [0], [1], [0, 0, 1, 1], [], []>} : vector<1x32xf32>, vector<32x8xf32>, vector<1x8xf32> -> vector<1x8xf32>
    %354 = arith.addf %353, %28 : vector<1x8xf32>
    %355 = vector.extract_strided_slice %354 {offsets = [0, 0], sizes = [1, 4], strides = [1, 1]} : vector<1x8xf32> to vector<1x4xf32>
    %356 = vector.extract_strided_slice %354 {offsets = [0, 4], sizes = [1, 4], strides = [1, 1]} : vector<1x8xf32> to vector<1x4xf32>
    %357 = math.tanh %356 : vector<1x4xf32>
    %cst_131 = arith.constant 1.000000e+00 : f32
    %358 = vector.broadcast %cst_131 : f32 to vector<1x4xf32>
    %359 = arith.addf %357, %358 : vector<1x4xf32>
    %cst_132 = arith.constant 6.000000e+00 : f32
    %360 = vector.broadcast %cst_132 : f32 to vector<1x4xf32>
    %361 = arith.mulf %360, %359 : vector<1x4xf32>
    %cst_133 = arith.constant -1.000000e+01 : f32
    %362 = vector.broadcast %cst_133 : f32 to vector<1x4xf32>
    %363 = arith.addf %362, %361 : vector<1x4xf32>
    %364 = math.exp %363 : vector<1x4xf32>
    %365 = vector.extract_strided_slice %29 {offsets = [1, 0], sizes = [1, 4], strides = [1, 1]} : vector<2x4xf32> to vector<1x4xf32>
    %366 = arith.mulf %365, %364 : vector<1x4xf32>
    %367 = arith.addf %355, %366 : vector<1x4xf32>
    %cst_134 = arith.constant -5.000000e-01 : f32
    %368 = vector.broadcast %cst_134 : f32 to vector<1x4xf32>
    %369 = arith.mulf %368, %365 : vector<1x4xf32>
    %370 = arith.mulf %369, %365 : vector<1x4xf32>
    %371 = arith.subf %370, %363 : vector<1x4xf32>
    %cst_135 = arith.constant dense<0.000000e+00> : vector<1xf32>
    %372 = vector.multi_reduction <add>, %371, %cst_135 [1] : vector<1x4xf32> to vector<1xf32>
    %373 = vector.shape_cast %372 : vector<1xf32> to vector<1x1xf32>
    %cst_136 = arith.constant 3.67575407 : f32
    %374 = vector.broadcast %cst_136 : f32 to vector<1x1xf32>
    %375 = arith.subf %373, %374 : vector<1x1xf32>
    %376 = math.tanh %355 : vector<1x4xf32>
    %377 = math.tanh %367 : vector<1x4xf32>
    %378 = arith.mulf %377, %377 : vector<1x4xf32>
    %cst_137 = arith.constant 1.000000e+00 : f32
    %379 = vector.broadcast %cst_137 : f32 to vector<1x4xf32>
    %380 = arith.subf %379, %378 : vector<1x4xf32>
    %cst_138 = arith.constant 0.000000e+00 : f32
    %381 = vector.broadcast %cst_138 : f32 to vector<1x4xf32>
    %382 = arith.maximumf %380, %381 : vector<1x4xf32>
    %cst_139 = arith.constant 9.99999997E-7 : f32
    %383 = vector.broadcast %cst_139 : f32 to vector<1x4xf32>
    %384 = arith.addf %382, %383 : vector<1x4xf32>
    %385 = math.log %384 : vector<1x4xf32>
    %cst_140 = arith.constant dense<0.000000e+00> : vector<1xf32>
    %386 = vector.multi_reduction <add>, %385, %cst_140 [1] : vector<1x4xf32> to vector<1xf32>
    %387 = vector.shape_cast %386 : vector<1xf32> to vector<1x1xf32>
    %388 = arith.subf %375, %387 : vector<1x1xf32>
    %cst_141 = arith.constant 0.000000e+00 : f32
    %389 = vector.broadcast %cst_141 : f32 to vector<1x115xf32>
    %390 = tpu.concatenate %376, %377, %363, %388, %389 in 1 : vector<1x4xf32>, vector<1x4xf32>, vector<1x4xf32>, vector<1x1xf32>, vector<1x115xf32> -> vector<1x128xf32>
    %c1 = arith.constant 1 : index
    %c0_142 = arith.constant 0 : index
    %391 = vector.load %arg18[%c1, %c0_142] : memref<2x128xf32, #tpu.memory_space<vmem>>, vector<1x128xf32>
    tpu.vector_store %arg18[%c1, %c0_142], %390 {strides = array<i32>} : memref<2x128xf32, #tpu.memory_space<vmem>>, vector<1x128xf32>,
    return
  }
}

</mosaic_0001>

<bundles_post_ra>
// kernel: actor_forward.1
= control target key start
LH: loop header
LB: loop body
LE: loop exit
PB: predicated region body
PF: predicated region fallthrough
CT: control target
= control target key end

     0   :  { %vm447_vm1 = vcmask 1043456   ;;  %s2482_s23 = smov 109   ;;  %s2483_s24 = smov 11   ;;  %vm443_vm2 = vcmask 31744   ;;  %vm500_vm3 = vcmask 244736   ;;  %vm589_vm4 = vcmask 89088   ;;  %s3831_s0 = inlined_call_operand.vmem [shape: f32[8,256], index: 0, kind: input, shape index: {}]   ;;  %s3832_s1 = inlined_call_operand.vmem [shape: f32[256,441], index: 1, kind: input, shape index: {}]   ;;  %s3833_s2 = inlined_call_operand.vmem [shape: f32[72,4], index: 2, kind: input, shape index: {}]   ;;  %s3834_s3 = inlined_call_operand.vmem [shape: f32[8,1], index: 3, kind: input, shape index: {}]   ;;  %s3835_s4 = inlined_call_operand.vmem [shape: f32[49,225], index: 4, kind: input, shape index: {}]   ;;  %s3836_s6 = inlined_call_operand.vmem [shape: f32[8,1], index: 6, kind: input, shape index: {}]   ;;  %s3837_s5 = inlined_call_operand.vmem [shape: f32[72,8], index: 5, kind: input, shape index: {}]   ;;  %s3838_s7 = inlined_call_operand.vmem [shape: f32[200,32], index: 7, kind: input, shape index: {}]   ;;  %s3839_s11 = inlined_call_operand.vmem [shape: f32[32,32], index: 11, kind: input, shape index: {}]   ;;  %s3840_s13 = inlined_call_operand.vmem [shape: f32[32,32], index: 13, kind: input, shape index: {}]   ;;  %s3841_s15 = inlined_call_operand.vmem [shape: f32[32,8], index: 15, kind: input, shape index: {}]   ;;  %s3842_s8 = inlined_call_operand.vmem [shape: f32[1,32], index: 8, kind: input, shape index: {}]   ;;  %s3843_s9 = inlined_call_operand.vmem [shape: f32[1,32], index: 9, kind: input, shape index: {}]   ;;  %s3844_s10 = inlined_call_operand.vmem [shape: f32[1,32], index: 10, kind: input, shape index: {}]   ;;  %s3845_s12 = inlined_call_operand.vmem [shape: f32[1,32], index: 12, kind: input, shape index: {}]   ;;  %s3846_s14 = inlined_call_operand.vmem [shape: f32[1,32], index: 14, kind: input, shape index: {}]   ;;  %s3847_s16 = inlined_call_operand.vmem [shape: f32[1,8], index: 16, kind: input, shape index: {}]   ;;  %s3848_s17 = inlined_call_operand.vmem [shape: f32[2,4], index: 17, kind: input, shape index: {}]   ;;  %s3849_s18 = inlined_call_operand.vmem [shape: f32[2,128], index: 18, kind: output, shape index: {}]  }
   0x1   :  { %3887 = sst [smem:[#allocation34_spill]] %s3831_s0  ;;  %s2484_s25 = smov 90   ;;  %vm650_vm5 = vcmask 334848   ;;  %vm717_vm6 = vcmask 1040384   ;;  %vm713_vm7 = vcmask 400384   ;;  %vm768_vm8 = vcmask 64512  }
   0x2   :  { %3888 = sst [smem:[#allocation35_spill]] %s3832_s1  ;;  %s2485_s26 = smov 41   ;;  %vm901_vm9 = vcmask 23552   ;;  %vm1128_vm10 = vcmask 1044480   ;;  %vm1048_vm11 = vcmask 1046528   ;;  %vm1088_vm12 = vcmask 1045504  }
   0x3   :  { %3889 = sst [smem:[#allocation36_spill]] %s3833_s2  ;;  %s2481_s2 = smov 30   ;;  %vm1207_vm13 = vcmask 1042432   ;;  %vm1247_vm14 = vcmask 1041408   ;;  %vm1016_vm15 = vcmask 203776  }
   0x4   :  { %s3890_s29 = sld [smem:[#allocation34_spill]]  ;;  %s2486_s27 = smov 60  }
   0x5   :  { %s3891_s20 = sld [smem:[#allocation35_spill]]  ;;  %s2487_s28 = smov 120  }
   0x6   :  { %s3892_s0 = sld [smem:[#allocation36_spill]]  ;;  %s2491_s21 = smov 103  }
   0x7   :  { %s2493_s22 = smov 106   ;;  %s2495_s1 = smov 81  }
   0xa   :  { %v2599_v0 = vld [vmem:[%s3890_s29] sm:$0xff]  ;;  %v2604_v1 = vld [vmem:[%s3890_s29 + $0x8] sm:$0xff]  ;;  %s2494_s29 = smov 53  }
   0xb   :  { %v134_v2 = vld [vmem:[%s3891_s20 + $0x1e0] sm:$0xff]  ;;  %v61_v3 = vmax.f32 %v2599_v0, %v2604_v1  ;;  %v135_v5 = vld [vmem:[%s3891_s20 + $0x1e8] sm:$0xff] }
   0xc   :  { %202 = vmatpush.msra.mxu0 %v134_v2  ;;  %v198_v4 = vld [vmem:[%s3891_s20 + $0x3e0] sm:$0xff]  ;;  %v199_v6 = vld [vmem:[%s3891_s20 + $0x3e8] sm:$0xff]  ;;  %242 = vmatpush.msra.mxu2 %v135_v5  ;;  %v136_v5 = vld [vmem:[%s3891_s20 + $0x1f0] sm:$0xff] }
   0xd   :  { %222 = vmatpush.msra.mxu1 %v198_v4  ;;  %v130_v7 = vld [vmem:[%s3891_s20 + $0x1c0] sm:$0xff]  ;;  %v131_v9 = vld [vmem:[%s3891_s20 + $0x1c8] sm:$0xff]  ;;  %62 = vmax.xlane.f32.xlu0 %v61_v3 }
   0xe   :  { %v194_v8 = vld [vmem:[%s3891_s20 + $0x3c0] sm:$0xff]  ;;  %262 = vmatpush.msra.mxu3 %v199_v6  ;;  %v195_v10 = vld [vmem:[%s3891_s20 + $0x3c8] sm:$0xff]  ;;  %203 = vmatpush.msra.mxu0 %v130_v7  ;;  %v200_v6 = vld [vmem:[%s3891_s20 + $0x3f0] sm:$0xff] }
   0xf   :  { %v126_v11 = vld [vmem:[%s3891_s20 + $0x1a0] sm:$0xff]  ;;  %223 = vmatpush.msra.mxu1 %v194_v8  ;;  %v127_v13 = vld [vmem:[%s3891_s20 + $0x1a8] sm:$0xff]  ;;  %243 = vmatpush.msra.mxu2 %v131_v9  ;;  %v137_v7 = vld [vmem:[%s3891_s20 + $0x1f8] sm:$0xff] }
  0x10   :  { %v190_v12 = vld [vmem:[%s3891_s20 + $0x3a0] sm:$0xff]  ;;  %v191_v14 = vld [vmem:[%s3891_s20 + $0x3a8] sm:$0xff]  ;;  %263 = vmatpush.msra.mxu3 %v195_v10  ;;  %204 = vmatpush.msra.mxu0 %v126_v11  ;;  %v201_v8 = vld [vmem:[%s3891_s20 + $0x3f8] sm:$0xff] }
  0x11   :  { %v122_v15 = vld [vmem:[%s3891_s20 + $0x180] sm:$0xff]  ;;  %224 = vmatpush.msra.mxu1 %v190_v12  ;;  %v123_v17 = vld [vmem:[%s3891_s20 + $0x188] sm:$0xff]  ;;  %244 = vmatpush.msra.mxu2 %v127_v13  ;;  %v132_v9 = vld [vmem:[%s3891_s20 + $0x1d0] sm:$0xff] }
  0x12   :  { %v186_v16 = vld [vmem:[%s3891_s20 + $0x380] sm:$0xff]  ;;  %v187_v18 = vld [vmem:[%s3891_s20 + $0x388] sm:$0xff]  ;;  %264 = vmatpush.msra.mxu3 %v191_v14  ;;  %205 = vmatpush.msra.mxu0 %v122_v15  ;;  %v196_v10 = vld [vmem:[%s3891_s20 + $0x3d0] sm:$0xff] }
  0x13   :  { %v118_v19 = vld [vmem:[%s3891_s20 + $0x160] sm:$0xff]  ;;  %225 = vmatpush.msra.mxu1 %v186_v16  ;;  %v119_v21 = vld [vmem:[%s3891_s20 + $0x168] sm:$0xff]  ;;  %245 = vmatpush.msra.mxu2 %v123_v17  ;;  %v133_v11 = vld [vmem:[%s3891_s20 + $0x1d8] sm:$0xff] }
  0x14   :  { %v182_v20 = vld [vmem:[%s3891_s20 + $0x360] sm:$0xff]  ;;  %v183_v22 = vld [vmem:[%s3891_s20 + $0x368] sm:$0xff]  ;;  %265 = vmatpush.msra.mxu3 %v187_v18  ;;  %206 = vmatpush.msra.mxu0 %v118_v19  ;;  %v197_v12 = vld [vmem:[%s3891_s20 + $0x3d8] sm:$0xff] }
  0x15   :  { %v114_v23 = vld [vmem:[%s3891_s20 + $0x140] sm:$0xff]  ;;  %226 = vmatpush.msra.mxu1 %v182_v20  ;;  %v115_v25 = vld [vmem:[%s3891_s20 + $0x148] sm:$0xff]  ;;  %246 = vmatpush.msra.mxu2 %v119_v21  ;;  %v128_v13 = vld [vmem:[%s3891_s20 + $0x1b0] sm:$0xff] }
  0x16   :  { %v178_v24 = vld [vmem:[%s3891_s20 + $0x340] sm:$0xff]  ;;  %v179_v26 = vld [vmem:[%s3891_s20 + $0x348] sm:$0xff]  ;;  %266 = vmatpush.msra.mxu3 %v183_v22  ;;  %207 = vmatpush.msra.mxu0 %v114_v23  ;;  %v192_v14 = vld [vmem:[%s3891_s20 + $0x3b0] sm:$0xff] }
  0x17   :  { %v110_v27 = vld [vmem:[%s3891_s20 + $0x120] sm:$0xff]  ;;  %227 = vmatpush.msra.mxu1 %v178_v24  ;;  %v111_v29 = vld [vmem:[%s3891_s20 + $0x128] sm:$0xff]  ;;  %247 = vmatpush.msra.mxu2 %v115_v25  ;;  %v129_v15 = vld [vmem:[%s3891_s20 + $0x1b8] sm:$0xff] }
  0x18   :  { %v174_v28 = vld [vmem:[%s3891_s20 + $0x320] sm:$0xff]  ;;  %v175_v30 = vld [vmem:[%s3891_s20 + $0x328] sm:$0xff]  ;;  %267 = vmatpush.msra.mxu3 %v179_v26  ;;  %208 = vmatpush.msra.mxu0 %v110_v27  ;;  %v193_v16 = vld [vmem:[%s3891_s20 + $0x3b8] sm:$0xff] }
  0x19   :  { %v106_v31 = vld [vmem:[%s3891_s20 + $0x100] sm:$0xff]  ;;  %228 = vmatpush.msra.mxu1 %v174_v28  ;;  %v107_v33 = vld [vmem:[%s3891_s20 + $0x108] sm:$0xff]  ;;  %248 = vmatpush.msra.mxu2 %v111_v29  ;;  %v124_v17 = vld [vmem:[%s3891_s20 + $0x190] sm:$0xff] }
  0x1a   :  { %v170_v32 = vld [vmem:[%s3891_s20 + $0x300] sm:$0xff]  ;;  %v171_v34 = vld [vmem:[%s3891_s20 + $0x308] sm:$0xff]  ;;  %268 = vmatpush.msra.mxu3 %v175_v30  ;;  %209 = vmatpush.msra.mxu0 %v106_v31  ;;  %v188_v18 = vld [vmem:[%s3891_s20 + $0x390] sm:$0xff] }
  0x1b   :  { %v102_v35 = vld [vmem:[%s3891_s20 + $0xe0] sm:$0xff]  ;;  %229 = vmatpush.msra.mxu1 %v170_v32  ;;  %v103_v37 = vld [vmem:[%s3891_s20 + $0xe8] sm:$0xff]  ;;  %249 = vmatpush.msra.mxu2 %v107_v33  ;;  %v125_v19 = vld [vmem:[%s3891_s20 + $0x198] sm:$0xff] }
  0x1c   :  { %v166_v36 = vld [vmem:[%s3891_s20 + $0x2e0] sm:$0xff]  ;;  %v167_v38 = vld [vmem:[%s3891_s20 + $0x2e8] sm:$0xff]  ;;  %269 = vmatpush.msra.mxu3 %v171_v34  ;;  %210 = vmatpush.msra.mxu0 %v102_v35  ;;  %v189_v20 = vld [vmem:[%s3891_s20 + $0x398] sm:$0xff] }
  0x1d   :  { %v98_v39 = vld [vmem:[%s3891_s20 + $0xc0] sm:$0xff]  ;;  %230 = vmatpush.msra.mxu1 %v166_v36  ;;  %v99_v41 = vld [vmem:[%s3891_s20 + $0xc8] sm:$0xff]  ;;  %250 = vmatpush.msra.mxu2 %v103_v37  ;;  %v120_v21 = vld [vmem:[%s3891_s20 + $0x170] sm:$0xff] }
  0x1e   :  { %v162_v40 = vld [vmem:[%s3891_s20 + $0x2c0] sm:$0xff]  ;;  %v163_v42 = vld [vmem:[%s3891_s20 + $0x2c8] sm:$0xff]  ;;  %270 = vmatpush.msra.mxu3 %v167_v38  ;;  %211 = vmatpush.msra.mxu0 %v98_v39  ;;  %v184_v22 = vld [vmem:[%s3891_s20 + $0x370] sm:$0xff] }
  0x1f   :  { %v94_v43 = vld [vmem:[%s3891_s20 + $0xa0] sm:$0xff]  ;;  %231 = vmatpush.msra.mxu1 %v162_v40  ;;  %v95_v45 = vld [vmem:[%s3891_s20 + $0xa8] sm:$0xff]  ;;  %251 = vmatpush.msra.mxu2 %v99_v41  ;;  %v121_v23 = vld [vmem:[%s3891_s20 + $0x178] sm:$0xff] }
  0x20   :  { %v158_v44 = vld [vmem:[%s3891_s20 + $0x2a0] sm:$0xff]  ;;  %v159_v46 = vld [vmem:[%s3891_s20 + $0x2a8] sm:$0xff]  ;;  %271 = vmatpush.msra.mxu3 %v163_v42  ;;  %212 = vmatpush.msra.mxu0 %v94_v43  ;;  %v185_v24 = vld [vmem:[%s3891_s20 + $0x378] sm:$0xff] }
  0x21   :  { %v90_v47 = vld [vmem:[%s3891_s20 + $0x80] sm:$0xff]  ;;  %232 = vmatpush.msra.mxu1 %v158_v44  ;;  %v91_v49 = vld [vmem:[%s3891_s20 + $0x88] sm:$0xff]  ;;  %252 = vmatpush.msra.mxu2 %v95_v45  ;;  %v116_v25 = vld [vmem:[%s3891_s20 + $0x150] sm:$0xff] }
  0x22   :  { %v154_v48 = vld [vmem:[%s3891_s20 + $0x280] sm:$0xff]  ;;  %v155_v50 = vld [vmem:[%s3891_s20 + $0x288] sm:$0xff]  ;;  %272 = vmatpush.msra.mxu3 %v159_v46  ;;  %213 = vmatpush.msra.mxu0 %v90_v47  ;;  %v180_v26 = vld [vmem:[%s3891_s20 + $0x350] sm:$0xff] }
  0x23   :  { %v86_v51 = vld [vmem:[%s3891_s20 + $0x60] sm:$0xff]  ;;  %233 = vmatpush.msra.mxu1 %v154_v48  ;;  %v87_v53 = vld [vmem:[%s3891_s20 + $0x68] sm:$0xff]  ;;  %253 = vmatpush.msra.mxu2 %v91_v49  ;;  %v117_v27 = vld [vmem:[%s3891_s20 + $0x158] sm:$0xff] }
  0x24   :  { %v150_v52 = vld [vmem:[%s3891_s20 + $0x260] sm:$0xff]  ;;  %v151_v54 = vld [vmem:[%s3891_s20 + $0x268] sm:$0xff]  ;;  %273 = vmatpush.msra.mxu3 %v155_v50  ;;  %214 = vmatpush.msra.mxu0 %v86_v51  ;;  %v181_v28 = vld [vmem:[%s3891_s20 + $0x358] sm:$0xff] }
  0x25   :  { %v82_v55 = vld [vmem:[%s3891_s20 + $0x40] sm:$0xff]  ;;  %234 = vmatpush.msra.mxu1 %v150_v52  ;;  %v83_v57 = vld [vmem:[%s3891_s20 + $0x48] sm:$0xff]  ;;  %254 = vmatpush.msra.mxu2 %v87_v53  ;;  %v112_v29 = vld [vmem:[%s3891_s20 + $0x130] sm:$0xff] }
  0x26   :  { %v146_v56 = vld [vmem:[%s3891_s20 + $0x240] sm:$0xff]  ;;  %v147_v58 = vld [vmem:[%s3891_s20 + $0x248] sm:$0xff]  ;;  %274 = vmatpush.msra.mxu3 %v151_v54  ;;  %215 = vmatpush.msra.mxu0 %v82_v55  ;;  %v176_v30 = vld [vmem:[%s3891_s20 + $0x330] sm:$0xff] }
  0x27   :  { %v78_v59 = vld [vmem:[%s3891_s20 + $0x20] sm:$0xff]  ;;  %235 = vmatpush.msra.mxu1 %v146_v56  ;;  %v79_v61 = vld [vmem:[%s3891_s20 + $0x28] sm:$0xff]  ;;  %255 = vmatpush.msra.mxu2 %v83_v57  ;;  %v113_v31 = vld [vmem:[%s3891_s20 + $0x138] sm:$0xff] }
  0x28   :  { %v142_v60 = vld [vmem:[%s3891_s20 + $0x220] sm:$0xff]  ;;  %v143_v62 = vld [vmem:[%s3891_s20 + $0x228] sm:$0xff]  ;;  %275 = vmatpush.msra.mxu3 %v147_v58  ;;  %216 = vmatpush.msra.mxu0 %v78_v59  ;;  %v177_v32 = vld [vmem:[%s3891_s20 + $0x338] sm:$0xff] }
  0x29   :  { %v74_v63 = vld [vmem:[%s3891_s20] sm:$0xff]  ;;  %236 = vmatpush.msra.mxu1 %v142_v60  ;;  %v75_v3 = vld [vmem:[%s3891_s20 + $0x8] sm:$0xff]  ;;  %256 = vmatpush.msra.mxu2 %v79_v61  ;;  %v108_v33 = vld [vmem:[%s3891_s20 + $0x110] sm:$0xff] }
  0x2a   :  { %v138_v2 = vld [vmem:[%s3891_s20 + $0x200] sm:$0xff]  ;;  %v139_v4 = vld [vmem:[%s3891_s20 + $0x208] sm:$0xff]  ;;  %276 = vmatpush.msra.mxu3 %v143_v62  ;;  %217 = vmatpush.msra.mxu0 %v74_v63  ;;  %v172_v34 = vld [vmem:[%s3891_s20 + $0x310] sm:$0xff] }
  0x2b   :  { %237 = vmatpush.msra.mxu1 %v138_v2  ;;  %257 = vmatpush.msra.mxu2 %v75_v3  ;;  %v109_v35 = vld [vmem:[%s3891_s20 + $0x118] sm:$0xff]  ;;  %v104_v37 = vld [vmem:[%s3891_s20 + $0xf0] sm:$0xff] }
  0x2c   :  { %277 = vmatpush.msra.mxu3 %v139_v4  ;;  %282 = vmatpush.msrb.mxu0 %v136_v5  ;;  %v173_v36 = vld [vmem:[%s3891_s20 + $0x318] sm:$0xff]  ;;  %v168_v38 = vld [vmem:[%s3891_s20 + $0x2f0] sm:$0xff] }
  0x2d   :  { %302 = vmatpush.msrb.mxu1 %v200_v6  ;;  %322 = vmatpush.msrb.mxu2 %v137_v7  ;;  %v105_v39 = vld [vmem:[%s3891_s20 + $0xf8] sm:$0xff]  ;;  %v100_v41 = vld [vmem:[%s3891_s20 + $0xd0] sm:$0xff] }
  0x2e   :  { %342 = vmatpush.msrb.mxu3 %v201_v8  ;;  %283 = vmatpush.msrb.mxu0 %v132_v9  ;;  %v169_v40 = vld [vmem:[%s3891_s20 + $0x2f8] sm:$0xff]  ;;  %v164_v42 = vld [vmem:[%s3891_s20 + $0x2d0] sm:$0xff] }
  0x2f   :  { %303 = vmatpush.msrb.mxu1 %v196_v10  ;;  %323 = vmatpush.msrb.mxu2 %v133_v11  ;;  %v101_v43 = vld [vmem:[%s3891_s20 + $0xd8] sm:$0xff]  ;;  %v96_v45 = vld [vmem:[%s3891_s20 + $0xb0] sm:$0xff] }
  0x30   :  { %343 = vmatpush.msrb.mxu3 %v197_v12  ;;  %284 = vmatpush.msrb.mxu0 %v128_v13  ;;  %v165_v44 = vld [vmem:[%s3891_s20 + $0x2d8] sm:$0xff]  ;;  %v160_v46 = vld [vmem:[%s3891_s20 + $0x2b0] sm:$0xff] }
  0x31   :  { %304 = vmatpush.msrb.mxu1 %v192_v14  ;;  %324 = vmatpush.msrb.mxu2 %v129_v15  ;;  %v97_v47 = vld [vmem:[%s3891_s20 + $0xb8] sm:$0xff]  ;;  %v92_v49 = vld [vmem:[%s3891_s20 + $0x90] sm:$0xff]  ;;  %v2479_v14 = vmov 1.0  }
  0x32   :  { %344 = vmatpush.msrb.mxu3 %v193_v16  ;;  %285 = vmatpush.msrb.mxu0 %v124_v17  ;;  %v161_v48 = vld [vmem:[%s3891_s20 + $0x2b8] sm:$0xff]  ;;  %v156_v50 = vld [vmem:[%s3891_s20 + $0x290] sm:$0xff] }
  0x33   :  { %305 = vmatpush.msrb.mxu1 %v188_v18  ;;  %325 = vmatpush.msrb.mxu2 %v125_v19  ;;  %v93_v51 = vld [vmem:[%s3891_s20 + $0x98] sm:$0xff]  ;;  %v88_v53 = vld [vmem:[%s3891_s20 + $0x70] sm:$0xff] }
  0x34   :  { %345 = vmatpush.msrb.mxu3 %v189_v20  ;;  %286 = vmatpush.msrb.mxu0 %v120_v21  ;;  %v157_v52 = vld [vmem:[%s3891_s20 + $0x298] sm:$0xff]  ;;  %v152_v54 = vld [vmem:[%s3891_s20 + $0x270] sm:$0xff] }
  0x35   :  { %306 = vmatpush.msrb.mxu1 %v184_v22  ;;  %326 = vmatpush.msrb.mxu2 %v121_v23  ;;  %v89_v55 = vld [vmem:[%s3891_s20 + $0x78] sm:$0xff]  ;;  %v84_v57 = vld [vmem:[%s3891_s20 + $0x50] sm:$0xff] }
  0x36   :  { %346 = vmatpush.msrb.mxu3 %v185_v24  ;;  %287 = vmatpush.msrb.mxu0 %v116_v25  ;;  %v153_v56 = vld [vmem:[%s3891_s20 + $0x278] sm:$0xff]  ;;  %v148_v58 = vld [vmem:[%s3891_s20 + $0x250] sm:$0xff] }
  0x37   :  { %307 = vmatpush.msrb.mxu1 %v180_v26  ;;  %327 = vmatpush.msrb.mxu2 %v117_v27  ;;  %v85_v59 = vld [vmem:[%s3891_s20 + $0x58] sm:$0xff]  ;;  %v80_v61 = vld [vmem:[%s3891_s20 + $0x30] sm:$0xff] }
  0x38   :  { %347 = vmatpush.msrb.mxu3 %v181_v28  ;;  %288 = vmatpush.msrb.mxu0 %v112_v29  ;;  %v149_v60 = vld [vmem:[%s3891_s20 + $0x258] sm:$0xff]  ;;  %v144_v62 = vld [vmem:[%s3891_s20 + $0x230] sm:$0xff] }
  0x39   :  { %308 = vmatpush.msrb.mxu1 %v176_v30  ;;  %328 = vmatpush.msrb.mxu2 %v113_v31  ;;  %v81_v63 = vld [vmem:[%s3891_s20 + $0x38] sm:$0xff]  ;;  %v76_v3 = vld [vmem:[%s3891_s20 + $0x10] sm:$0xff]  ;;  %v3037_v30 = vld [vmem:[%s3892_s0] sm:$0xff] }
  0x3a   :  { %348 = vmatpush.msrb.mxu3 %v177_v32  ;;  %289 = vmatpush.msrb.mxu0 %v108_v33  ;;  %v145_v2 = vld [vmem:[%s3891_s20 + $0x238] sm:$0xff]  ;;  %v140_v4 = vld [vmem:[%s3891_s20 + $0x210] sm:$0xff]  ;;  %v3044_v33 = vld [vmem:[%s3892_s0 + $0x8] sm:$0xff] }
  0x3b   :  { %309 = vmatpush.msrb.mxu1 %v172_v34  ;;  %329 = vmatpush.msrb.mxu2 %v109_v35  ;;  %v77_v5 = vld [vmem:[%s3891_s20 + $0x18] sm:$0xff] }
  0x3c   :  { %349 = vmatpush.msrb.mxu3 %v173_v36  ;;  %290 = vmatpush.msrb.mxu0 %v104_v37  ;;  %v141_v6 = vld [vmem:[%s3891_s20 + $0x218] sm:$0xff]  ;;  %s2480_s20 = smov 79   ;;  %v394_v36 = vld [vmem:[%s3834_s3] sm:$0xff]  ;;  %v2488_v37 = vmov 0   ;;  %s2492_s3 = smov 3  }
  0x3d   :  { %310 = vmatpush.msrb.mxu1 %v168_v38  ;;  %330 = vmatpush.msrb.mxu2 %v105_v39  ;;  %v3029_v28 = vld [vmem:[%s3892_s0 + $0x18] sm:$0xff] }
  0x3e   :  { %350 = vmatpush.msrb.mxu3 %v169_v40  ;;  %291 = vmatpush.msrb.mxu0 %v100_v41  ;;  %v3055_v41 = vld [vmem:[%s3892_s0 + $0x28] sm:$0xff] }
  0x3f   :  { %311 = vmatpush.msrb.mxu1 %v164_v42  ;;  %331 = vmatpush.msrb.mxu2 %v101_v43 }
  0x40   :  { %351 = vmatpush.msrb.mxu3 %v165_v44  ;;  %292 = vmatpush.msrb.mxu0 %v96_v45  ;;  %v3062_v44 = vld [vmem:[%s3892_s0 + $0x10] sm:$0xff] }
  0x41   :  { %312 = vmatpush.msrb.mxu1 %v160_v46  ;;  %332 = vmatpush.msrb.mxu2 %v97_v47  ;;  %v3074_v46 = vld [vmem:[%s3892_s0 + $0x38] sm:$0xff] }
  0x42   :  { %352 = vmatpush.msrb.mxu3 %v161_v48  ;;  %293 = vmatpush.msrb.mxu0 %v92_v49  ;;  %v3080_v48 = vld [vmem:[%s3892_s0 + $0x30] sm:$0xff]  ;;  %v3090_v49 = vld [vmem:[%s3892_s0 + $0x20] sm:$0xff] }
  0x43   :  { %313 = vmatpush.msrb.mxu1 %v156_v50  ;;  %333 = vmatpush.msrb.mxu2 %v93_v51  ;;  %v3098_v51 = vld [vmem:[%s3892_s0 + $0x40] sm:$0xff]  ;;  %s3853_s0 = smov 78  }
  0x44   :  { %353 = vmatpush.msrb.mxu3 %v157_v52  ;;  %294 = vmatpush.msrb.mxu0 %v88_v53  ;;  %v3106_v53 = vld [vmem:[%s3835_s4 + $0x60] sm:$0x1] }
  0x45   :  { %314 = vmatpush.msrb.mxu1 %v152_v54  ;;  %334 = vmatpush.msrb.mxu2 %v89_v55  ;;  %v3111_v54 = vld [vmem:[%s3835_s4 + $0x68] sm:$0x1]  ;;  %v3120_v55 = vld [vmem:[%s3835_s4 + $0x50] sm:$0xff] }
  0x46   :  { %354 = vmatpush.msrb.mxu3 %v153_v56  ;;  %295 = vmatpush.msrb.mxu0 %v84_v57  ;;  %v3125_v56 = vld [vmem:[%s3835_s4 + $0x58] sm:$0xff]  ;;  %v3132_v57 = vld [vmem:[%s3835_s4 + $0x40] sm:$0xff] }
  0x47   :  { %315 = vmatpush.msrb.mxu1 %v148_v58  ;;  %335 = vmatpush.msrb.mxu2 %v85_v59  ;;  %v3137_v58 = vld [vmem:[%s3835_s4 + $0x48] sm:$0xff]  ;;  %v3144_v59 = vld [vmem:[%s3835_s4 + $0x30] sm:$0xff] }
  0x48   :  { %355 = vmatpush.msrb.mxu3 %v149_v60  ;;  %296 = vmatpush.msrb.mxu0 %v80_v61  ;;  %v3149_v60 = vld [vmem:[%s3835_s4 + $0x38] sm:$0xff]  ;;  %v3156_v61 = vld [vmem:[%s3835_s4 + $0x20] sm:$0xff] }
  0x49   :  { %316 = vmatpush.msrb.mxu1 %v144_v62  ;;  %336 = vmatpush.msrb.mxu2 %v81_v63  ;;  %v3161_v62 = vld [vmem:[%s3835_s4 + $0x28] sm:$0xff]  ;;  %v3168_v63 = vld [vmem:[%s3835_s4 + $0x10] sm:$0xff] }
  0x4a   :  { %356 = vmatpush.msrb.mxu3 %v145_v2  ;;  %297 = vmatpush.msrb.mxu0 %v76_v3  ;;  %v3173_v2 = vld [vmem:[%s3835_s4 + $0x18] sm:$0xff]  ;;  %v3180_v3 = vld [vmem:[%s3835_s4] sm:$0xff] }
  0x4b   :  { %317 = vmatpush.msrb.mxu1 %v140_v4  ;;  %337 = vmatpush.msrb.mxu2 %v77_v5  ;;  %v3185_v4 = vld [vmem:[%s3835_s4 + $0x8] sm:$0xff]  ;;  %s2489_s4 = smov 28  }
  0x4c   :  { %357 = vmatpush.msrb.mxu3 %v141_v6  ;;  %2445 = vset.pattern.permute.xlu2 %v2488_v37 }
  0x4d   :  { %2456 = vset.pattern.permute.xlu0 %v2488_v37  ;;  %v3229_v37 = vld [vmem:[%s3837_s5] sm:$0xff] }
  0x80   :  { %v63_v7 = vpop.xlane.xlu0 %62 }
  0x81   :  { %v64_v8 = vrot.slane %v63_v7, 4 }
  0x83   :  { %v65_v9 = vmax.f32 %v63_v7, %v64_v8 }
  0x85   :  { %v66_v10 = vrot.slane %v65_v9, 2 }
  0x87   :  { %v67_v11 = vmax.f32 %v65_v9, %v66_v10 }
  0x89   :  { %v68_v12 = vrot.slane %v67_v11, 1 }
  0x8b   :  { %v69_v13 = vmax.f32 %v67_v11, %v68_v12 }
  0x8d   :  { %vm70_vm0 = vcmp.gt.f32.partialorder %v69_v13, 1.0 }
  0x8e   :  { %v71_v15 = vsel %vm70_vm0, 0.003921569, %v2479_v14  ;;  %vm1322_vm0 = vcmask 253952  }
  0x8f   :  { %v72_v16 = vmul.f32 %v71_v15, %v2599_v0  ;;  %v73_v17 = vmul.f32 %v71_v15, %v2604_v1 }
  0x91   :  { %218 = vmatmul.f32.vlgmr.msra.gmra.mxu0 %v72_v16  ;;  %238 = vmatmul.f32.vlgmr.msra.gmra.mxu1 %v73_v17 }
  0x92   :  { %258 = vmatmul.f32.vlgmr.msra.gmra.mxu2 %v72_v16  ;;  %278 = vmatmul.f32.vlgmr.msra.gmra.mxu3 %v73_v17 }
  0x99   :  { %298 = vmatmul.f32.vlgmr.msrb.gmra.mxu0 %v72_v16  ;;  %318 = vmatmul.f32.vlgmr.msrb.gmra.mxu1 %v73_v17 }
  0x9a   :  { %338 = vmatmul.f32.vlgmr.msrb.gmra.mxu2 %v72_v16  ;;  %358 = vmatmul.f32.vlgmr.msrb.gmra.mxu3 %v73_v17 }
 0x10e   :  { %v219_v18 = vpop.f32.mrf.mxu0  ;;  %v239_v19 = vpop.f32.mrf.mxu1 }
 0x10f   :  { %v2994_v20 = vadd.f32 %v239_v19, %v219_v18 }
 0x111   :  { %441 = vrot.lane.b32.xlu1 %v2994_v20, %s2480_s20  ;;  %496 = vrot.lane.b32.xlu0 %v2994_v20, %s2481_s2 }
 0x112   :  { %2323 = vmatpush.msk.msra.mxu1 %vm447_vm1, %v2994_v20 }
 0x113   :  { %2324 = vmatmul.msk.f32.vlgmr.msra.gmra.mxu1 %vm443_vm2, %v3037_v30 }
 0x115   :  { %v259_v0 = vpop.f32.mrf.mxu2  ;;  %v279_v1 = vpop.f32.mrf.mxu3 }
 0x116   :  { %v3002_v21 = vadd.f32 %v279_v1, %v259_v0  ;;  %v299_v22 = vpop.f32.mrf.mxu0  ;;  %v319_v23 = vpop.f32.mrf.mxu1 }
 0x117   :  { %v3004_v24 = vadd.f32 %v319_v23, %v299_v22 }
 0x118   :  { %528 = vrot.lane.b32.xlu2 %v3002_v21, %s2482_s23 }
 0x119   :  { %498 = vrot.lane.b32.xlu1 %v3002_v21, %s2481_s2  ;;  %587 = vrot.lane.b32.xlu0 %v3004_v24, %s2483_s24 }
 0x11d   :  { %v339_v25 = vpop.f32.mrf.mxu2  ;;  %v359_v26 = vpop.f32.mrf.mxu3 }
 0x11e   :  { %v3016_v27 = vadd.f32 %v359_v26, %v339_v25 }
 0x120   :  { %617 = vrot.lane.b32.xlu2 %v3004_v24, %s2484_s25 }
 0x121   :  { %646 = vrot.lane.b32.xlu1 %v3004_v24, %s2485_s26 }
 0x128   :  { %648 = vrot.lane.b32.xlu2 %v3016_v27, %s2485_s26 }
 0x129   :  { %556 = vrot.lane.b32.xlu1 %v3002_v21, %s2486_s27 }
 0x130   :  { %585 = vrot.lane.b32.xlu2 %v3002_v21, %s2483_s24 }
 0x131   :  { %678 = vrot.lane.b32.xlu1 %v3016_v27, %s2487_s28 }
 0x138   :  { %708 = vperm.xlu2 %2445, %v394_v36   ;;  %v3854_v36 = vrot.slane %v3016_v27, 4 }
 0x172   :  { %v529_v29 = vpop.permute.xlu2 %528 }
 0x173   :  { %2327 = vmatpush.msk.msra.mxu3 %vm447_vm1, %v529_v29 }
 0x174   :  { %2328 = vmatmul.msk.f32.vlgmr.msra.gmra.mxu3 %vm443_vm2, %v3029_v28 }
 0x17a   :  { %v618_v31 = vpop.permute.xlu2 %617 }
 0x182   :  { %v649_v32 = vpop.permute.xlu2 %648 }
 0x183   :  { %v442_v34 = vpop.permute.xlu1 %441  ;;  %v497_v35 = vpop.permute.xlu0 %496 }
 0x184   :  { %2321 = vmatpush.msk.msra.mxu0 %vm447_vm1, %v442_v34  ;;  %v3206_v34 = vrot.slane %v2994_v20, 4  ;;  %v3222_v20 = vrot.slane %v3004_v24, 4 }
 0x185   :  { %2322 = vmatmul.msk.f32.vlgmr.msra.gmra.mxu0 %vm443_vm2, %v3044_v33 }
 0x18a   :  { %v586_v38 = vpop.permute.xlu2 %585 }
 0x18b   :  { %v499_v39 = vpop.permute.xlu1 %498  ;;  %v588_v40 = vpop.permute.xlu0 %587 }
 0x18c   :  { %v501_v42 = vsel %vm500_vm3, %v497_v35, %v499_v39  ;;  %v590_v43 = vsel %vm589_vm4, %v586_v38, %v588_v40  ;;  %v1522_v35 = vrot.slane %v3002_v21, 4  ;;  %v3236_v38 = vld [vmem:[%s3837_s5 + $0x20] sm:$0xff] }
 0x18d   :  { %2325 = vmatpush.msk.msra.mxu2 %vm447_vm1, %v501_v42  ;;  %2331 = vmatpush.msk.msrb.mxu1 %vm447_vm1, %v590_v43  ;;  %v3244_v43 = vld [vmem:[%s3837_s5 + $0x28] sm:$0xff] }
 0x18e   :  { %2332 = vmatmul.msk.f32.vlgmr.msrb.gmra.mxu1 %vm443_vm2, %v3055_v41  ;;  %2326 = vmatmul.msk.f32.vlgmr.msra.gmra.mxu2 %vm443_vm2, %v3062_v44  ;;  %3893 = vst [vmem:[#allocation2_spill] sm:$0xff] %v3244_v43 }
 0x18f   :  { %2333 = vmatpush.msk.msrb.mxu2 %vm447_vm1, %v618_v31  ;;  %2339 = vmatpush.msk.msra.mxu1 %vm717_vm6, %v3106_v53 }
 0x190   :  { %v492_v6 = vpop.f32.mrf.mxu1 }
 0x191   :  { %2341 = vmatpush.msk.msra.mxu2 %vm717_vm6, %v3111_v54  ;;  %734 = vmatpush.msra.mxu1 %v3120_v55 }
 0x192   :  { %v3189_v1 = vpop.permute.xlu2 %708 }
 0x193   :  { %v647_v45 = vpop.permute.xlu1 %646  ;;  %754 = vmatpush.msra.mxu2 %v3125_v56  ;;  %735 = vmatpush.msra.mxu1 %v3132_v57 }
 0x194   :  { %v651_v47 = vsel %vm650_vm5, %v647_v45, %v649_v32  ;;  %v395_v32 = vld [vmem:[%s3836_s6] sm:$0xff] }
 0x195   :  { %2335 = vmatpush.msk.msrb.mxu3 %vm447_vm1, %v651_v47  ;;  %755 = vmatpush.msra.mxu2 %v3137_v58  ;;  %v3251_v47 = vld [vmem:[%s3837_s5 + $0x8] sm:$0xff] }
 0x196   :  { %2336 = vmatmul.msk.f32.vlgmr.msrb.gmra.mxu3 %vm443_vm2, %v3074_v46  ;;  %2334 = vmatmul.msk.f32.vlgmr.msrb.gmra.mxu2 %vm443_vm2, %v3080_v48 }
 0x197   :  { %736 = vmatpush.msra.mxu1 %v3144_v59  ;;  %756 = vmatpush.msra.mxu2 %v3149_v60 }
 0x199   :  { %737 = vmatpush.msra.mxu1 %v3156_v61  ;;  %757 = vmatpush.msra.mxu2 %v3161_v62 }
 0x19b   :  { %v557_v50 = vpop.permute.xlu1 %556  ;;  %738 = vmatpush.msra.mxu1 %v3168_v63  ;;  %758 = vmatpush.msra.mxu2 %v3173_v2 }
 0x19c   :  { %2329 = vmatpush.msk.msrb.mxu0 %vm447_vm1, %v557_v50 }
 0x19d   :  { %2330 = vmatmul.msk.f32.vlgmr.msrb.gmra.mxu0 %vm443_vm2, %v3090_v49  ;;  %739 = vmatpush.msra.mxu1 %v3180_v3 }
 0x19e   :  { %759 = vmatpush.msra.mxu2 %v3185_v4 }
 0x1a3   :  { %v679_v52 = vpop.permute.xlu1 %678 }
 0x1a4   :  { %2337 = vmatpush.msk.msra.mxu0 %vm447_vm1, %v679_v52 }
 0x1a5   :  { %2338 = vmatmul.msk.f32.vlgmr.msra.gmra.mxu0 %vm443_vm2, %v3098_v51 }
 0x1f7   :  { %v552_v10 = vpop.f32.mrf.mxu3 }
 0x202   :  { %v467_v5 = vpop.f32.mrf.mxu0 }
 0x203   :  { %v493_v7 = vadd.f32 %v492_v6, %v467_v5  ;;  %v3258_v5 = vld [vmem:[%s3837_s5 + $0x10] sm:$0xff]  ;;  %v3263_v6 = vld [vmem:[%s3837_s5 + $0x18] sm:$0xff] }
 0x204   :  { %3894 = vst [vmem:[#allocation3_spill] sm:$0xff] %v3263_v6 }
 0x20b   :  { %v613_v13 = vpop.f32.mrf.mxu1 }
 0x211   :  { %v524_v8 = vpop.f32.mrf.mxu2 }
 0x212   :  { %v527_v9 = vadd.f32 %v524_v8, %v493_v7 }
 0x214   :  { %v555_v11 = vadd.f32 %v552_v10, %v527_v9  ;;  %v3272_v9 = vld [vmem:[%s3837_s5 + $0x30] sm:$0xff]  ;;  %v3277_v10 = vld [vmem:[%s3837_s5 + $0x40] sm:$0xff] }
 0x215   :  { %3895 = vst [vmem:[#allocation4_spill] sm:$0xff] %v3277_v10 }
 0x219   :  { %v641_v15 = vpop.f32.mrf.mxu2  ;;  %v674_v17 = vpop.f32.mrf.mxu3 }
 0x21a   :  { %v580_v12 = vpop.f32.mrf.mxu0 }
 0x21b   :  { %v583_v14 = vadd.f32 %v580_v12, %v555_v11  ;;  %v3282_v12 = vld [vmem:[%s3837_s5 + $0x38] sm:$0xff] }
 0x21c   :  { %3896 = vst [vmem:[#allocation5_spill] sm:$0xff] %v3282_v12 }
 0x21d   :  { %v616_v16 = vadd.f32 %v613_v13, %v583_v14  ;;  %v3295_v14 = vld [vmem:[%s3838_s7 + $0x60] sm:$0xff] }
 0x21f   :  { %v644_v18 = vadd.f32 %v641_v15, %v616_v16  ;;  %v3300_v15 = vld [vmem:[%s3838_s7 + $0x18] sm:$0xff]  ;;  %v3303_v16 = vrot.slane %v3295_v14, 3 }
 0x220   :  { %3897 = vst [vmem:[#allocation6_spill] sm:$0xff] %v3300_v15 }
 0x221   :  { %v677_v19 = vadd.f32 %v674_v17, %v644_v18  ;;  %3898 = vst [vmem:[#allocation7_spill] sm:$0xff] %v3303_v16  ;;  %v402_v17 = vld [vmem:[%s3838_s7 + $0x30] sm:$0xff]  ;;  %v405_v18 = vld [vmem:[%s3838_s7 + $0x48] sm:$0xff] }
 0x222   :  { %v702_v0 = vpop.f32.mrf.mxu0 }
 0x223   :  { %v705_v22 = vadd.f32 %v702_v0, %v677_v19  ;;  %v3313_v19 = vrot.slane %v402_v17, 1  ;;  %v3315_v0 = vrot.slane %v405_v18, 2 }
 0x225   :  { %v711_v23 = vadd.f32 %v3189_v1, %v705_v22  ;;  %3899 = vst [vmem:[#allocation8_spill] sm:$0xff] %v3315_v0  ;;  %v407_v22 = vld [vmem:[%s3838_s7 + $0x58] sm:$0xff] }
 0x227   :  { %v712_v25 = vmax.f32 %v711_v23, 0.0  ;;  %v401_v23 = vld [vmem:[%s3838_s7 + $0x28] sm:$0xff] }
 0x229   :  { %2340 = vmatmul.msk.f32.vlgmr.msra.gmra.mxu1 %vm713_vm7, %v712_v25  ;;  %2342 = vmatmul.msk.f32.vlgmr.msra.gmra.mxu2 %vm713_vm7, %v712_v25  ;;  %v404_v25 = vld [vmem:[%s3838_s7 + $0x40] sm:$0xff] }
 0x2a6   :  { %v741_v26 = vpop.f32.mrf.mxu1 }
 0x2a7   :  { %869 = vrot.lane.b32.xlu2 %v741_v26, %s2489_s4  ;;  %815 = vrot.lane.b32.xlu1 %v741_v26, %s3853_s0  ;;  %s2496_s0 = smov 56  }
 0x2a8   :  { %765 = vrot.lane.b32.xlu0 %v741_v26, %s2491_s21  ;;  %810 = vmatpush.msrb.mxu0 %v741_v26 }
 0x2a9   :  { %2344 = vmatmul.msk.f32.vlgmr.msrb.gmra.mxu0 %vm768_vm8, %v3229_v37 }
 0x2ac   :  { %v761_v29 = vpop.f32.mrf.mxu2 }
 0x2ad   :  { %v2446_v31 = vpack.i.bf16 %v761_v29, %v741_v26 }
 0x2af   :  { %2447 = vrot.lane.b32.xlu2 %v2446_v31, %s2492_s3  ;;  %928 = vrot.lane.b32.xlu1 %v761_v29, %s2493_s22  ;;  %v1052_v31 = vrot.slane %v401_v23, 1  ;;  %v3374_v23 = vld [vmem:[%s3838_s7 + $0x78] sm:$0xff] }
 0x2b0   :  { %842 = vrot.lane.b32.xlu0 %v741_v26, %s2494_s29  ;;  %v3331_v26 = vld [vmem:[%s3838_s7 + $0x10] sm:$0xff] }
 0x2b1   :  { %3900 = vst [vmem:[#allocation9_spill] sm:$0xff] %v3331_v26 }
 0x2b7   :  { %1011 = vperm.xlu2 %2445, %v395_v32   ;;  %955 = vrot.lane.b32.xlu1 %v761_v29, %s2495_s1  ;;  %v1092_v32 = vrot.slane %v404_v25, 2  ;;  %v3381_v25 = vld [vmem:[%s3838_s7] sm:$0xff] }
 0x2b8   :  { %982 = vrot.lane.b32.xlu0 %v761_v29, %s2496_s0  ;;  %v1132_v29 = vrot.slane %v407_v22, 3  ;;  %v1129_v22 = vrot.slane %v405_v18, 3  ;;  %3905 = vst [vmem:[#allocation14_spill] sm:$0xff] %v3381_v25  ;;  %v1049_v18 = vrot.slane %v3300_v15, 1 }
 0x2bf   :  { %1476 = vrot.lane.b32.xlu2 %v3206_v34, %s2480_s20 }
 0x2c7   :  { %1523 = vrot.lane.b32.xlu2 %v3206_v34, %s2481_s2 }
 0x2cf   :  { %1525 = vrot.lane.b32.xlu2 %v1522_v35, %s2481_s2 }
 0x2d7   :  { %1576 = vrot.lane.b32.xlu2 %v1522_v35, %s2486_s27 }
 0x2df   :  { %1551 = vrot.lane.b32.xlu2 %v1522_v35, %s2482_s23 }
 0x2e7   :  { %1602 = vrot.lane.b32.xlu2 %v1522_v35, %s2483_s24  ;;  %v406_v35 = vld [vmem:[%s3838_s7 + $0x50] sm:$0xff] }
 0x2ef   :  { %1684 = vrot.lane.b32.xlu2 %v3854_v36, %s2487_s28  ;;  %v410_v36 = vld [vmem:[%s3838_s7 + $0x70] sm:$0xff] }
 0x2f7   :  { %1656 = vrot.lane.b32.xlu2 %v3222_v20, %s2485_s26 }
 0x301   :  { %v870_v21 = vpop.permute.xlu2 %869 }
 0x302   :  { %890 = vmatpush.msrb.mxu2 %v870_v21  ;;  %v1130_v21 = vrot.slane %v406_v35, 3 }
 0x303   :  { %2347 = vmatmul.msk.f32.vlgmr.msrb.gmra.mxu2 %vm768_vm8, %v3236_v38 }
 0x309   :  { %v2448_v24 = vpop.permute.xlu2 %2447 }
 0x30a   :  { %v2450_v39 = vunpack.i.h.bf16 %v2448_v24  ;;  %v2449_v40 = vunpack.i.l.bf16 %v2448_v24  ;;  %v400_v24 = vld [vmem:[%s3838_s7 + $0x20] sm:$0xff] }
 0x30c   :  { %v902_v42 = vsel %vm901_vm9, %v2449_v40, %v2450_v39  ;;  %v403_v39 = vld [vmem:[%s3838_s7 + $0x38] sm:$0xff]  ;;  %v3349_v40 = vsel %vm1128_vm10, %v1132_v29, %v3303_v16 }
 0x30d   :  { %922 = vmatpush.msra.mxu0 %v902_v42  ;;  %3901 = vst [vmem:[#allocation10_spill] sm:$0xff] %v3349_v40  ;;  %v3354_v42 = vld [vmem:[%s3838_s7 + $0x8] sm:$0xff] }
 0x30e   :  { %2348 = vmatmul.msk.f32.vlgmr.msra.gmra.mxu0 %vm768_vm8, %v3244_v43  ;;  %3902 = vst [vmem:[#allocation11_spill] sm:$0xff] %v3354_v42 }
 0x30f   :  { %2352 = vmatpush.msk.msrb.mxu0 %vm717_vm6, %v3300_v15 }
 0x311   :  { %v3290_v13 = vpop.permute.xlu2 %1011  ;;  %1036 = vmatpush.msrb.mxu0 %v3331_v26  ;;  %v1208_v26 = vrot.slane %v3374_v23, 5 }
 0x313   :  { %1037 = vmatpush.msrb.mxu0 %v3354_v42  ;;  %v414_v42 = vld [vmem:[%s3838_s7 + $0x90] sm:$0xff] }
 0x314   :  { %v1248_v15 = vrot.slane %v414_v42, 6 }
 0x315   :  { %1038 = vmatpush.msrb.mxu0 %v3381_v25  ;;  %v413_v25 = vld [vmem:[%s3838_s7 + $0x88] sm:$0xff] }
 0x319   :  { %v816_v45 = vpop.permute.xlu1 %815 }
 0x31a   :  { %v766_v50 = vpop.permute.xlu0 %765 }
 0x31b   :  { %787 = vmatpush.msra.mxu3 %v766_v50  ;;  %v3362_v50 = vsel %vm1088_vm12, %v1092_v32, %v3315_v0 }
 0x31c   :  { %2343 = vmatmul.msk.f32.vlgmr.msra.gmra.mxu3 %vm768_vm8, %v3251_v47  ;;  %3903 = vst [vmem:[#allocation12_spill] sm:$0xff] %v3362_v50 }
 0x31d   :  { %836 = vmatpush.msrb.mxu3 %v816_v45  ;;  %v3358_v45 = vsel %vm1048_vm11, %v1052_v31, %v3313_v19 }
 0x321   :  { %v929_v52 = vpop.permute.xlu1 %928 }
 0x322   :  { %v843_v7 = vpop.permute.xlu0 %842  ;;  %949 = vmatpush.msra.mxu3 %v929_v52  ;;  %v1050_v52 = vrot.slane %v400_v24, 1  ;;  %v1089_v24 = vrot.slane %v402_v17, 2  ;;  %v1171_v17 = vrot.slane %v410_v36, 4 }
 0x323   :  { %863 = vmatpush.msrb.mxu1 %v843_v7  ;;  %v3364_v7 = vpop.permute.xlu2 %1476 }
 0x324   :  { %2345 = vmatmul.msk.f32.vlgmr.msrb.gmra.mxu3 %vm768_vm8, %v3258_v5  ;;  %2346 = vmatmul.msk.f32.vlgmr.msrb.gmra.mxu1 %vm768_vm8, %v3263_v6  ;;  %v3384_v35 = vsel %vm1048_vm11, %v1050_v52, %v1052_v31 }
 0x325   :  { %2354 = vmatpush.msk.msrb.mxu3 %vm717_vm6, %v3313_v19 }
 0x327   :  { %1076 = vmatpush.msrb.mxu3 %v3358_v45 }
 0x329   :  { %v956_v8 = vpop.permute.xlu1 %955  ;;  %1077 = vmatpush.msrb.mxu3 %v3384_v35 }
 0x32a   :  { %v983_v11 = vpop.permute.xlu0 %982  ;;  %976 = vmatpush.msra.mxu1 %v956_v8  ;;  %v3369_v8 = vsel %vm1128_vm10, %v1130_v21, %v1132_v29  ;;  %v3387_v29 = vrot.slane %v3374_v23, 4 }
 0x32b   :  { %1003 = vmatpush.msra.mxu2 %v983_v11  ;;  %3904 = vst [vmem:[#allocation13_spill] sm:$0xff] %v3369_v8  ;;  %v1090_v11 = vrot.slane %v403_v39, 2  ;;  %v420_v39 = vld [vmem:[%s3838_s7 + $0xc0] sm:$0xff] }
 0x32c   :  { %2349 = vmatmul.msk.f32.vlgmr.msra.gmra.mxu3 %vm768_vm8, %v3272_v9  ;;  %2351 = vmatmul.msk.f32.vlgmr.msra.gmra.mxu2 %vm768_vm8, %v3277_v10  ;;  %3906 = vst [vmem:[#allocation15_spill] sm:$0xff] %v3387_v29 }
 0x32d   :  { %2350 = vmatmul.msk.f32.vlgmr.msra.gmra.mxu1 %vm768_vm8, %v3282_v12  ;;  %2358 = vmatpush.msk.msrb.mxu2 %vm717_vm6, %v3303_v16  ;;  %v3399_v31 = vsel %vm1088_vm12, %v1090_v11, %v1092_v32  ;;  %v417_v16 = vld [vmem:[%s3838_s7 + $0xa8] sm:$0xff]  ;;  %v3418_v32 = vsel %vm1048_vm11, %v1049_v18, %v1050_v52  ;;  %v3421_v36 = vsel %vm1088_vm12, %v1089_v24, %v1090_v11  ;;  %v416_v52 = vld [vmem:[%s3838_s7 + $0xa0] sm:$0xff] }
 0x32e   :  { %2356 = vmatpush.msk.msrb.mxu1 %vm717_vm6, %v3315_v0  ;;  %3907 = vst [vmem:[#allocation16_spill] sm:$0xff] %v3399_v31  ;;  %2360 = vmatpush.msk.msra.mxu0 %vm717_vm6, %v3387_v29  ;;  %v3441_v11 = vsel %vm447_vm1, %v1171_v17, %v3387_v29  ;;  %v418_v0 = vld [vmem:[%s3838_s7 + $0xb0] sm:$0xff]  ;;  %v412_v29 = vld [vmem:[%s3838_s7 + $0x80] sm:$0xff]  ;;  %v1287_v10 = vrot.slane %v417_v16, 7 }
 0x32f   :  { %1156 = vmatpush.msrb.mxu2 %v3349_v40  ;;  %v3402_v40 = vsel %vm1128_vm10, %v1129_v22, %v1130_v21  ;;  %3910 = vst [vmem:[#allocation19_spill] sm:$0xff] %v3421_v36  ;;  %v3423_v21 = vrot.slane %v414_v42, 5  ;;  %v3425_v22 = vrot.slane %v417_v16, 6  ;;  %1078 = vmatpush.msrb.mxu3 %v3418_v32  ;;  %v1288_v12 = vrot.slane %v418_v0, 7 }
 0x330   :  { %1116 = vmatpush.msrb.mxu1 %v3362_v50  ;;  %3908 = vst [vmem:[#allocation17_spill] sm:$0xff] %v3402_v40  ;;  %v3404_v50 = vrot.slane %v420_v39, 7  ;;  %v409_v39 = vld [vmem:[%s3838_s7 + $0x68] sm:$0xff]  ;;  %1195 = vmatpush.msra.mxu0 %v3441_v11 }
 0x331   :  { %1157 = vmatpush.msrb.mxu2 %v3369_v8  ;;  %v419_v8 = vld [vmem:[%s3838_s7 + $0xb8] sm:$0xff]  ;;  %3911 = vst [vmem:[#allocation20_spill] sm:$0xff] %v3425_v22  ;;  %v1169_v24 = vrot.slane %v409_v39, 4  ;;  %2362 = vmatpush.msk.msra.mxu3 %vm717_vm6, %v3423_v21  ;;  %v3499_v42 = vsel %vm717_vm6, %v1287_v10, %v1288_v12 }
 0x332   :  { %3909 = vst [vmem:[#allocation18_spill] sm:$0xff] %v3404_v50  ;;  %1117 = vmatpush.msrb.mxu1 %v3399_v31  ;;  %v1290_v18 = vrot.slane %v419_v8, 7  ;;  %v1211_v31 = vrot.slane %v413_v25, 5  ;;  %v415_v8 = vld [vmem:[%s3838_s7 + $0x98] sm:$0xff] }
 0x333   :  { %1158 = vmatpush.msrb.mxu2 %v3402_v40  ;;  %3912 = vst [vmem:[#allocation21_spill] sm:$0xff] %v3441_v11  ;;  %v1251_v40 = vrot.slane %v416_v52, 6  ;;  %v3462_v39 = vsel %vm447_vm1, %v1169_v24, %v1171_v17  ;;  %v1168_v17 = vrot.slane %v3295_v14, 4  ;;  %v1209_v11 = vrot.slane %v412_v29, 5  ;;  %v3491_v14 = vpop.permute.xlu2 %1523 }
 0x334   :  { %1118 = vmatpush.msrb.mxu1 %v3421_v36  ;;  %v3459_v25 = vsel %vm717_vm6, %v1290_v18, %v3404_v50  ;;  %3914 = vst [vmem:[#allocation23_spill] sm:$0xff] %v3462_v39  ;;  %v3466_v0 = vsel %vm1207_vm13, %v1211_v31, %v3423_v21  ;;  %1196 = vmatpush.msra.mxu0 %v3462_v39  ;;  %v1249_v36 = vrot.slane %v415_v8, 6 }
 0x335   :  { %2366 = vmatpush.msk.msra.mxu2 %vm717_vm6, %v3404_v50  ;;  %3913 = vst [vmem:[#allocation22_spill] sm:$0xff] %v3459_v25  ;;  %v3474_v52 = vsel %vm1247_vm14, %v1251_v40, %v3425_v22  ;;  %v3477_v50 = vsel %vm717_vm6, %v1288_v12, %v1290_v18  ;;  %1235 = vmatpush.msra.mxu3 %v3466_v0 }
 0x336   :  { %2364 = vmatpush.msk.msra.mxu1 %vm717_vm6, %v3425_v22  ;;  %3915 = vst [vmem:[#allocation24_spill] sm:$0xff] %v3474_v52  ;;  %v3486_v22 = vsel %vm447_vm1, %v1168_v17, %v1169_v24  ;;  %v3489_v18 = vsel %vm1207_vm13, %v1209_v11, %v1211_v31  ;;  %v3496_v16 = vsel %vm1247_vm14, %v1249_v36, %v1251_v40  ;;  %v812_v40 = vpop.f32.mrf.mxu0 }
 0x337   :  { %3916 = vst [vmem:[#allocation25_spill] sm:$0xff] %v3477_v50  ;;  %1314 = vmatpush.msra.mxu2 %v3459_v25  ;;  %1197 = vmatpush.msra.mxu0 %v3486_v22  ;;  %v3502_v23 = vsel %vm1207_vm13, %v1208_v26, %v1209_v11  ;;  %v3507_v29 = vsel %vm1247_vm14, %v1248_v15, %v1249_v36  ;;  %vm1354_vm13 = vcmask 261120   ;;  %vm1472_vm14 = vcmask 105472  }
 0x338   :  { %1275 = vmatpush.msra.mxu1 %v3474_v52  ;;  %3917 = vst [vmem:[#allocation26_spill] sm:$0xff] %v3486_v22  ;;  %1236 = vmatpush.msra.mxu3 %v3489_v18 }
 0x339   :  { %1315 = vmatpush.msra.mxu2 %v3477_v50  ;;  %3918 = vst [vmem:[#allocation27_spill] sm:$0xff] %v3496_v16 }
 0x33a   :  { %3919 = vst [vmem:[#allocation28_spill] sm:$0xff] %v3499_v42  ;;  %1276 = vmatpush.msra.mxu1 %v3496_v16  ;;  %1237 = vmatpush.msra.mxu3 %v3502_v23 }
 0x33b   :  { %3920 = vst [vmem:[#allocation29_spill] sm:$0xff] %v3507_v29  ;;  %1316 = vmatpush.msra.mxu2 %v3499_v42  ;;  %v3512_v12 = vpop.permute.xlu2 %1525 }
 0x33c   :  { %1277 = vmatpush.msra.mxu1 %v3507_v29 }
 0x343   :  { %v1577_v42 = vpop.permute.xlu2 %1576 }
 0x386   :  { %v892_v24 = vpop.f32.mrf.mxu2 }
 0x38b   :  { %v924_v50 = vpop.f32.mrf.mxu0 }
 0x39f   :  { %v789_v31 = vpop.f32.mrf.mxu3 }
 0x3a0   :  { %v813_v26 = vadd.f32 %v812_v40, %v789_v31  ;;  %v3518_v31 = vld [vmem:[%s3839_s11 + $0x18] sm:$0xff]  ;;  %v1552_v40 = vpop.permute.xlu2 %1551 }
 0x3a1   :  { %v865_v10 = vpop.f32.mrf.mxu1 }
 0x3a7   :  { %v838_v11 = vpop.f32.mrf.mxu3 }
 0x3a8   :  { %v841_v8 = vadd.f32 %v838_v11, %v813_v26  ;;  %v3562_v26 = vld [vmem:[%s3839_s11] sm:$0xff]  ;;  %v3575_v11 = vld [vmem:[%s3841_s15 + $0x8] sm:$0xff] }
 0x3a9   :  { %3922 = vst [vmem:[#allocation31_spill] sm:$0xff] %v3575_v11 }
 0x3aa   :  { %v868_v17 = vadd.f32 %v865_v10, %v841_v8  ;;  %v978_v22 = vpop.f32.mrf.mxu1  ;;  %v3582_v8 = vld [vmem:[%s3840_s13] sm:$0xff] }
 0x3ab   :  { %3923 = vst [vmem:[#allocation32_spill] sm:$0xff] %v3582_v8 }
 0x3ac   :  { %v895_v16 = vadd.f32 %v892_v24, %v868_v17  ;;  %v3589_v17 = vld [vmem:[%s3841_s15] sm:$0xff] }
 0x3ad   :  { %3924 = vst [vmem:[#allocation33_spill] sm:$0xff] %v3589_v17 }
 0x3ae   :  { %v927_v15 = vadd.f32 %v924_v50, %v895_v16 }
 0x3af   :  { %v951_v36 = vpop.f32.mrf.mxu3  ;;  %v1005_v52 = vpop.f32.mrf.mxu2 }
 0x3b0   :  { %v954_v25 = vadd.f32 %v951_v36, %v927_v15 }
 0x3b2   :  { %v981_v39 = vadd.f32 %v978_v22, %v954_v25  ;;  %v3524_v22 = vld [vmem:[%s3839_s11 + $0x10] sm:$0xff]  ;;  %v3537_v25 = vld [vmem:[%s3841_s15 + $0x18] sm:$0xff] }
 0x3b4   :  { %v1008_v43 = vadd.f32 %v1005_v52, %v981_v39  ;;  %v3542_v39 = vld [vmem:[%s3839_s11 + $0x8] sm:$0xff]  ;;  %v3549_v52 = vld [vmem:[%s3840_s13 + $0x10] sm:$0xff] }
 0x3b6   :  { %v1014_v29 = vadd.f32 %v3290_v13, %v1008_v43  ;;  %v3530_v43 = vld [vmem:[%s3840_s13 + $0x18] sm:$0xff] }
 0x3b8   :  { %v1015_v6 = vmax.f32 %v1014_v29, 0.0  ;;  %v3557_v29 = vld [vmem:[%s3841_s15 + $0x10] sm:$0xff] }
 0x3ba   :  { %2353 = vmatmul.msk.f32.vlgmr.msrb.gmra.mxu0 %vm1016_vm15, %v1015_v6  ;;  %v1044_v50 = vrot.slane %v1015_v6, 1  ;;  %v1084_v16 = vrot.slane %v1015_v6, 2  ;;  %v1124_v10 = vrot.slane %v1015_v6, 3  ;;  %v1164_v24 = vrot.slane %v1015_v6, 4 }
 0x3bb   :  { %1370 = vmatpush.msrb.mxu0 %v3518_v31  ;;  %v1243_v15 = vrot.slane %v1015_v6, 6  ;;  %v1203_v36 = vrot.slane %v1015_v6, 5 }
 0x3bc   :  { %2355 = vmatmul.msk.f32.vlgmr.msrb.gmra.mxu3 %vm1016_vm15, %v1044_v50  ;;  %2357 = vmatmul.msk.f32.vlgmr.msrb.gmra.mxu1 %vm1016_vm15, %v1084_v16  ;;  %v3594_v50 = vpop.permute.xlu2 %1602  ;;  %v1283_v16 = vrot.slane %v1015_v6, 7  ;;  %v3617_v6 = vld [vmem:[%s3842_s8] sm:$0x1] }
 0x3bd   :  { %2359 = vmatmul.msk.f32.vlgmr.msrb.gmra.mxu2 %vm1016_vm15, %v1124_v10  ;;  %1371 = vmatpush.msrb.mxu0 %v3524_v22  ;;  %v1527_v10 = vsel %vm500_vm3, %v3491_v14, %v3512_v12 }
 0x3be   :  { %2372 = vmatpush.msk.msrb.mxu2 %vm447_vm1, %v3364_v7  ;;  %1394 = vmatpush.msrb.mxu3 %v3530_v43  ;;  %v3569_v7 = vld [vmem:[%s3840_s13 + $0x8] sm:$0xff] }
 0x3bf   :  { %1418 = vmatpush.msrb.mxu1 %v3537_v25  ;;  %1372 = vmatpush.msrb.mxu0 %v3542_v39  ;;  %3921 = vst [vmem:[#allocation30_spill] sm:$0xff] %v3569_v7 }
 0x3c0   :  { %1395 = vmatpush.msrb.mxu3 %v3549_v52 }
 0x3c1   :  { %1419 = vmatpush.msrb.mxu1 %v3557_v29  ;;  %1373 = vmatpush.msrb.mxu0 %v3562_v26 }
 0x3c2   :  { %1396 = vmatpush.msrb.mxu3 %v3569_v7  ;;  %2361 = vmatmul.msk.f32.vlgmr.msra.gmra.mxu0 %vm1016_vm15, %v1164_v24 }
 0x3c3   :  { %1420 = vmatpush.msrb.mxu1 %v3575_v11  ;;  %2374 = vmatpush.msk.msra.mxu0 %vm447_vm1, %v3206_v34 }
 0x3c4   :  { %1397 = vmatpush.msrb.mxu3 %v3582_v8  ;;  %2365 = vmatmul.msk.f32.vlgmr.msra.gmra.mxu1 %vm1016_vm15, %v1243_v15  ;;  %v1685_v34 = vpop.permute.xlu2 %1684 }
 0x3c5   :  { %1421 = vmatpush.msrb.mxu1 %v3589_v17  ;;  %2363 = vmatmul.msk.f32.vlgmr.msra.gmra.mxu3 %vm1016_vm15, %v1203_v36 }
 0x3c6   :  { %2367 = vmatmul.msk.f32.vlgmr.msra.gmra.mxu2 %vm1016_vm15, %v1283_v16  ;;  %2376 = vmatpush.msk.msra.mxu3 %vm447_vm1, %v1527_v10 }
 0x3c7   :  { %2378 = vmatpush.msk.msra.mxu1 %vm447_vm1, %v1552_v40  ;;  %2380 = vmatpush.msk.msra.mxu2 %vm447_vm1, %v1577_v42 }
 0x3ce   :  { %2373 = vmatmul.msk.f32.vlgmr.msrb.gmra.mxu2 %vm443_vm2, %v3044_v33 }
 0x3cf   :  { %2388 = vmatpush.msk.msrb.mxu2 %vm447_vm1, %v1685_v34 }
 0x3d6   :  { %2381 = vmatmul.msk.f32.vlgmr.msra.gmra.mxu2 %vm443_vm2, %v3090_v49 }
 0x3de   :  { %2389 = vmatmul.msk.f32.vlgmr.msrb.gmra.mxu2 %vm443_vm2, %v3098_v51 }
 0x437   :  { %v1040_v14 = vpop.f32.mrf.mxu0 }
 0x438   :  { %v1043_v42 = vadd.f32 %v1040_v14, %v3617_v6  ;;  %v3925_v14 = vrot.slane %v3016_v27, 4 }
 0x439   :  { %v1120_v40 = vpop.f32.mrf.mxu1 }
 0x43f   :  { %v1080_v12 = vpop.f32.mrf.mxu3  ;;  %v1199_v16 = vpop.f32.mrf.mxu0 }
 0x440   :  { %v1083_v24 = vadd.f32 %v1080_v12, %v1043_v42  ;;  %v1160_v15 = vpop.f32.mrf.mxu2  ;;  %v2497_v42 = vmov 32.0  }
 0x441   :  { %v1279_v17 = vpop.f32.mrf.mxu1  ;;  %2457 = vrcp.f32 %v2497_v42 }
 0x442   :  { %v1123_v33 = vadd.f32 %v1120_v40, %v1083_v24 }
 0x444   :  { %v1163_v36 = vadd.f32 %v1160_v15, %v1123_v33 }
 0x446   :  { %v1202_v10 = vadd.f32 %v1199_v16, %v1163_v36 }
 0x447   :  { %v2458_v12 = vpop.eup %2457 }
 0x448   :  { %v1239_v49 = vpop.f32.mrf.mxu3  ;;  %v1327_v40 = vmul.f32 32.0, %v2458_v12  ;;  %vm1331_vm3 = vweird.f32 %v2458_v12 }
 0x449   :  { %v1242_v34 = vadd.f32 %v1239_v49, %v1202_v10  ;;  %v1318_v8 = vpop.f32.mrf.mxu2 }
 0x44a   :  { %v1328_v24 = vsub.f32 1.0, %v1327_v40 }
 0x44b   :  { %v1282_v51 = vadd.f32 %v1279_v17, %v1242_v34 }
 0x44c   :  { %v1329_v33 = vmul.f32 %v2458_v12, %v1328_v24 }
 0x44d   :  { %v1321_v11 = vadd.f32 %v1318_v8, %v1282_v51 }
 0x44e   :  { %v1330_v17 = vadd.f32 %v2458_v12, %v1329_v33 }
 0x44f   :  { %v1323_v7 = vsel %vm1322_vm0, %v1321_v11, 0.0 }
 0x450   :  { %1324 = vadd.xlane.f32.xlu0 %v1323_v7  ;;  %v3626_v15 = vsel %vm1331_vm3, %v2458_v12, %v1330_v17  ;;  %v3641_v17 = vld [vmem:[%s3844_s10] sm:$0x1] }
 0x464   :  { %1630 = vrot.lane.b32.xlu0 %v3222_v20, %s2484_s25 }
 0x46c   :  { %1658 = vrot.lane.b32.xlu0 %v3925_v14, %s2485_s26 }
 0x4c3   :  { %v1325_v8 = vpop.xlane.xlu0 %1324 }
 0x4c4   :  { %v1333_v7 = vmul.f32 %v3626_v15, %v1325_v8 }
 0x4c6   :  { %v1334_v36 = vsub.f32 %v1321_v11, %v1333_v7  ;;  %v3636_v11 = vld [vmem:[%s3843_s9] sm:$0x1] }
 0x4c8   :  { %v1335_v16 = vmul.f32 %v1334_v36, %v1334_v36 }
 0x4ca   :  { %v1336_v10 = vsel %vm1322_vm0, %v1335_v16, 0.0 }
 0x4cb   :  { %1337 = vadd.xlane.f32.xlu1 %v1336_v10 }
 0x4e4   :  { %1604 = vrot.lane.b32.xlu1 %v3222_v20, %s2483_s24 }
 0x53e   :  { %v1338_v27 = vpop.xlane.xlu1 %1337 }
 0x53f   :  { %v1339_v49 = vmul.f32 %v1338_v27, %v3626_v15 }
 0x541   :  { %v1340_v34 = vadd.f32 1e-05, %v1339_v49 }
 0x543   :  { %2459 = vrsqrt.f32 %v1340_v34  ;;  %vm1347_vm11 = vweird.f32 %v1340_v34 }
 0x549   :  { %v2460_v51 = vpop.eup %2459 }
 0x54a   :  { %v1342_v14 = vmul.f32 %v2460_v51, %v1340_v34  ;;  %vm1348_vm10 = vweird.f32 %v2460_v51 }
 0x54b   :  { %vm1349_vm12 = vmor %vm1347_vm11, %vm1348_vm10 }
 0x54c   :  { %v1343_v42 = vmul.f32 %v2460_v51, %v1342_v14 }
 0x54e   :  { %v1344_v12 = vmul.f32 0.5, %v1343_v42 }
 0x550   :  { %v1345_v40 = vsub.f32 1.5, %v1344_v12 }
 0x552   :  { %v1346_v24 = vmul.f32 %v2460_v51, %v1345_v40 }
 0x554   :  { %v1350_v20 = vsel %vm1349_vm12, %v2460_v51, %v1346_v24 }
 0x555   :  { %v1351_v33 = vmul.f32 %v1350_v20, %v1334_v36 }
 0x556   :  { %v1605_v7 = vpop.permute.xlu1 %1604 }
 0x557   :  { %v1352_v8 = vmul.f32 %v1351_v33, %v3636_v11  ;;  %v1606_v10 = vsel %vm589_vm4, %v3594_v50, %v1605_v7  ;;  %v1631_v50 = vpop.permute.xlu0 %1630 }
 0x559   :  { %v1353_v16 = vadd.f32 %v1352_v8, %v3641_v17 }
 0x55b   :  { %2368 = vmatmul.msk.f32.vlgmr.msrb.gmra.mxu0 %vm1354_vm13, %v1353_v16 }
 0x55c   :  { %2382 = vmatpush.msk.msrb.mxu0 %vm447_vm1, %v1606_v10 }
 0x563   :  { %2375 = vmatmul.msk.f32.vlgmr.msra.gmra.mxu0 %vm443_vm2, %v3037_v30  ;;  %v3664_v30 = vld [vmem:[%s3845_s12] sm:$0x1] }
 0x564   :  { %2390 = vmatpush.msk.msra.mxu0 %vm717_vm6, %v3106_v53 }
 0x566   :  { %1724 = vmatpush.msra.mxu0 %v3120_v55 }
 0x568   :  { %1725 = vmatpush.msra.mxu0 %v3132_v57 }
 0x56a   :  { %1726 = vmatpush.msra.mxu0 %v3144_v59  ;;  %v1657_v59 = vpop.permute.xlu2 %1656 }
 0x56b   :  { %2383 = vmatmul.msk.f32.vlgmr.msrb.gmra.mxu0 %vm443_vm2, %v3055_v41  ;;  %v3684_v41 = vld [vmem:[%s3846_s14] sm:$0x1]  ;;  %s3926_s14 = smov 78  }
 0x56c   :  { %1727 = vmatpush.msra.mxu0 %v3156_v61 }
 0x56e   :  { %1728 = vmatpush.msra.mxu0 %v3168_v63 }
 0x570   :  { %1729 = vmatpush.msra.mxu0 %v3180_v3 }
 0x5d8   :  { %v1375_v53 = vpop.f32.mrf.mxu0 }
 0x5d9   :  { %v1376_v55 = vadd.f32 %v1375_v53, %v3664_v30  ;;  %v3931_v53 = vld [vmem:[#allocation4_spill] sm:$0xff] }
 0x5db   :  { %v1378_v57 = vmax.f32 %v1376_v55, 0.0  ;;  %v3933_v55 = vld [vmem:[#allocation8_spill] sm:$0xff] }
 0x5dd   :  { %2369 = vmatmul.msk.f32.vlgmr.msrb.gmra.mxu3 %vm1354_vm13, %v1378_v57  ;;  %v3934_v57 = vld [vmem:[#allocation7_spill] sm:$0xff] }
 0x5de   :  { %2384 = vmatpush.msk.msrb.mxu3 %vm447_vm1, %v1631_v50  ;;  %v3935_v50 = vld [vmem:[#allocation11_spill] sm:$0xff] }
 0x5e5   :  { %2377 = vmatmul.msk.f32.vlgmr.msra.gmra.mxu3 %vm443_vm2, %v3062_v44 }
 0x5e6   :  { %2392 = vmatpush.msk.msra.mxu3 %vm717_vm6, %v3111_v54 }
 0x5e8   :  { %1744 = vmatpush.msra.mxu3 %v3125_v56  ;;  %v1659_v56 = vpop.permute.xlu0 %1658 }
 0x5ea   :  { %1745 = vmatpush.msra.mxu3 %v3137_v58 }
 0x5ec   :  { %1746 = vmatpush.msra.mxu3 %v3149_v60  ;;  %v1660_v60 = vsel %vm650_vm5, %v1657_v59, %v1659_v56  ;;  %v3938_v56 = vld [vmem:[#allocation14_spill] sm:$0xff]  ;;  %v3940_v59 = vld [vmem:[#allocation13_spill] sm:$0xff] }
 0x5ed   :  { %2385 = vmatmul.msk.f32.vlgmr.msrb.gmra.mxu3 %vm443_vm2, %v3080_v48  ;;  %v1497_v48 = vpop.f32.mrf.mxu2 }
 0x5ee   :  { %1747 = vmatpush.msra.mxu3 %v3161_v62  ;;  %v1519_v62 = vpop.f32.mrf.mxu0 }
 0x5ef   :  { %v1520_v63 = vadd.f32 %v1519_v62, %v1497_v48  ;;  %v3942_v48 = vld [vmem:[#allocation19_spill] sm:$0xff]  ;;  %v3943_v62 = vld [vmem:[#allocation17_spill] sm:$0xff] }
 0x5f0   :  { %1748 = vmatpush.msra.mxu3 %v3173_v2 }
 0x5f2   :  { %1749 = vmatpush.msra.mxu3 %v3185_v4 }
 0x5f5   :  { %v1597_v3 = vpop.f32.mrf.mxu2 }
 0x5f6   :  { %v1626_v49 = vpop.f32.mrf.mxu0 }
 0x660   :  { %v1399_v44 = vpop.f32.mrf.mxu3 }
 0x661   :  { %v1400_v54 = vadd.f32 %v1399_v44, %v3684_v41  ;;  %v3936_v44 = vld [vmem:[#allocation12_spill] sm:$0xff] }
 0x663   :  { %v1402_v58 = vmax.f32 %v1400_v54, 0.0  ;;  %v3937_v54 = vld [vmem:[#allocation10_spill] sm:$0xff] }
 0x665   :  { %2370 = vmatmul.msk.f32.vlgmr.msrb.gmra.mxu1 %vm1354_vm13, %v1402_v58  ;;  %v3939_v58 = vld [vmem:[#allocation16_spill] sm:$0xff] }
 0x666   :  { %2386 = vmatpush.msk.msrb.mxu1 %vm447_vm1, %v1660_v60  ;;  %v3941_v60 = vld [vmem:[#allocation15_spill] sm:$0xff] }
 0x668   :  { %v1547_v2 = vpop.f32.mrf.mxu3 }
 0x669   :  { %v1550_v4 = vadd.f32 %v1547_v2, %v1520_v63  ;;  %v3944_v63 = vld [vmem:[#allocation21_spill] sm:$0xff]  ;;  %v3945_v2 = vld [vmem:[#allocation20_spill] sm:$0xff] }
 0x66d   :  { %2379 = vmatmul.msk.f32.vlgmr.msra.gmra.mxu1 %vm443_vm2, %v3029_v28  ;;  %v1705_v28 = vpop.f32.mrf.mxu2 }
 0x670   :  { %v1651_v51 = vpop.f32.mrf.mxu3 }
 0x675   :  { %2387 = vmatmul.msk.f32.vlgmr.msrb.gmra.mxu1 %vm443_vm2, %v3074_v46 }
 0x6e2   :  { %v3694_v61 = vpop.f32.mrf.mxu1 }
 0x6ea   :  { %v1572_v36 = vpop.f32.mrf.mxu1 }
 0x6eb   :  { %v1575_v27 = vadd.f32 %v1572_v36, %v1550_v4  ;;  %v3947_v4 = vld [vmem:[#allocation23_spill] sm:$0xff]  ;;  %v3948_v36 = vld [vmem:[#allocation24_spill] sm:$0xff] }
 0x6ed   :  { %v1600_v34 = vadd.f32 %v1597_v3, %v1575_v27  ;;  %v3946_v3 = vld [vmem:[#allocation18_spill] sm:$0xff] }
 0x6ee   :  { %v3949_v27 = vld [vmem:[#allocation22_spill] sm:$0xff] }
 0x6ef   :  { %v1629_v14 = vadd.f32 %v1626_v49, %v1600_v34  ;;  %v3950_v49 = vld [vmem:[#allocation26_spill] sm:$0xff]  ;;  %v3951_v34 = vld [vmem:[#allocation27_spill] sm:$0xff] }
 0x6f1   :  { %v1654_v42 = vadd.f32 %v1651_v51, %v1629_v14  ;;  %v3952_v51 = vld [vmem:[#allocation25_spill] sm:$0xff] }
 0x6f2   :  { %v1680_v12 = vpop.f32.mrf.mxu1  ;;  %v3953_v14 = vld [vmem:[#allocation29_spill] sm:$0xff] }
 0x6f3   :  { %v1683_v40 = vadd.f32 %v1680_v12, %v1654_v42  ;;  %v3954_v42 = vld [vmem:[#allocation28_spill] sm:$0xff] }
 0x6f5   :  { %v1708_v24 = vadd.f32 %v1705_v28, %v1683_v40 }
 0x6f7   :  { %v1709_v46 = vadd.f32 %v1708_v24, %v3189_v1 }
 0x6f9   :  { %v1710_v20 = vmax.f32 %v1709_v46, 0.0 }
 0x6fb   :  { %2391 = vmatmul.msk.f32.vlgmr.msra.gmra.mxu0 %vm713_vm7, %v1710_v20  ;;  %2393 = vmatmul.msk.f32.vlgmr.msra.gmra.mxu3 %vm713_vm7, %v1710_v20  ;;  %vm1445_vm7 = vcmask 24576  }
 0x778   :  { %v1731_v33 = vpop.f32.mrf.mxu0 }
 0x779   :  { %1846 = vrot.lane.b32.xlu0 %v1731_v33, %s2489_s4  ;;  %1755 = vrot.lane.b32.xlu2 %v1731_v33, %s2491_s21 }
 0x77a   :  { %1793 = vmatpush.msra.mxu2 %v1731_v33 }
 0x77b   :  { %2395 = vmatmul.msk.f32.vlgmr.msra.gmra.mxu2 %vm768_vm8, %v3229_v37 }
 0x77e   :  { %v1751_v8 = vpop.f32.mrf.mxu3 }
 0x77f   :  { %v2451_v7 = vpack.i.bf16 %v1751_v8, %v1731_v33 }
 0x781   :  { %2452 = vrot.lane.b32.xlu1 %v2451_v7, %s2492_s3  ;;  %1822 = vrot.lane.b32.xlu0 %v1731_v33, %s2494_s29 }
 0x782   :  { %1798 = vrot.lane.b32.xlu2 %v1731_v33, %s3926_s14 }
 0x789   :  { %1946 = vrot.lane.b32.xlu1 %v1751_v8, %s2496_s0  ;;  %1922 = vrot.lane.b32.xlu0 %v1751_v8, %s2495_s1  ;;  %s2500_s1 = smov 12  }
 0x78a   :  { %1898 = vrot.lane.b32.xlu2 %v1751_v8, %s2493_s22 }
 0x7d3   :  { %v1756_v1 = vpop.permute.xlu2 %1755 }
 0x7d4   :  { %1773 = vmatpush.msra.mxu1 %v1756_v1 }
 0x7d5   :  { %2394 = vmatmul.msk.f32.vlgmr.msra.gmra.mxu1 %vm768_vm8, %v3251_v47 }
 0x7dc   :  { %v1799_v37 = vpop.permute.xlu2 %1798 }
 0x7dd   :  { %1816 = vmatpush.msrb.mxu0 %v1799_v37 }
 0x7de   :  { %2396 = vmatmul.msk.f32.vlgmr.msrb.gmra.mxu0 %vm768_vm8, %v3258_v5 }
 0x7e4   :  { %v1899_v16 = vpop.permute.xlu2 %1898 }
 0x7e5   :  { %1916 = vmatpush.msra.mxu0 %v1899_v16 }
 0x7e6   :  { %2400 = vmatmul.msk.f32.vlgmr.msra.gmra.mxu0 %vm768_vm8, %v3272_v9 }
 0x7e7   :  { %2405 = vmatpush.msk.msrb.mxu0 %vm717_vm6, %v3313_v19 }
 0x7e9   :  { %2012 = vmatpush.msrb.mxu0 %v3358_v45  ;;  %v3927_v45 = vld [vmem:[#allocation3_spill] sm:$0xff] }
 0x7eb   :  { %v1847_v10 = vpop.permute.xlu0 %1846  ;;  %2013 = vmatpush.msrb.mxu0 %v3384_v35  ;;  %v3928_v35 = vld [vmem:[#allocation2_spill] sm:$0xff] }
 0x7ec   :  { %1864 = vmatpush.msrb.mxu2 %v1847_v10 }
 0x7ed   :  { %2398 = vmatmul.msk.f32.vlgmr.msrb.gmra.mxu2 %vm768_vm8, %v3236_v38  ;;  %2014 = vmatpush.msrb.mxu0 %v3418_v32  ;;  %v3929_v32 = vld [vmem:[#allocation6_spill] sm:$0xff] }
 0x7ef   :  { %2413 = vmatpush.msk.msra.mxu0 %vm717_vm6, %v3423_v21 }
 0x7f1   :  { %2108 = vmatpush.msra.mxu0 %v3466_v0 }
 0x7f3   :  { %2109 = vmatpush.msra.mxu0 %v3489_v18  ;;  %v2453_v47 = vpop.permute.xlu1 %2452  ;;  %v1823_v5 = vpop.permute.xlu0 %1822  ;;  %v3930_v18 = vld [vmem:[#allocation9_spill] sm:$0xff] }
 0x7f4   :  { %v2455_v9 = vunpack.i.h.bf16 %v2453_v47  ;;  %v2454_v19 = vunpack.i.l.bf16 %v2453_v47  ;;  %1840 = vmatpush.msrb.mxu1 %v1823_v5 }
 0x7f5   :  { %2110 = vmatpush.msra.mxu0 %v3502_v23  ;;  %2397 = vmatmul.msk.f32.vlgmr.msrb.gmra.mxu1 %vm768_vm8, %v3927_v45  ;;  %v3932_v23 = vld [vmem:[#allocation5_spill] sm:$0xff] }
 0x7f6   :  { %v1875_v38 = vsel %vm901_vm9, %v2454_v19, %v2455_v9  ;;  %vm1470_vm9 = vcmask 97280  }
 0x7f7   :  { %1892 = vmatpush.msrb.mxu3 %v1875_v38 }
 0x7f8   :  { %2399 = vmatmul.msk.f32.vlgmr.msrb.gmra.mxu3 %vm768_vm8, %v3928_v35 }
 0x7f9   :  { %2403 = vmatpush.msk.msra.mxu3 %vm717_vm6, %v3929_v32 }
 0x7fb   :  { %v1947_v21 = vpop.permute.xlu1 %1946  ;;  %v1923_v0 = vpop.permute.xlu0 %1922  ;;  %1988 = vmatpush.msra.mxu3 %v3930_v18  ;;  %v3955_v18 = vld [vmem:[#allocation30_spill] sm:$0xff] }
 0x7fc   :  { %1940 = vmatpush.msra.mxu1 %v1923_v0  ;;  %1964 = vmatpush.msra.mxu2 %v1947_v21 }
 0x7fd   :  { %2402 = vmatmul.msk.f32.vlgmr.msra.gmra.mxu2 %vm768_vm8, %v3931_v53  ;;  %2401 = vmatmul.msk.f32.vlgmr.msra.gmra.mxu1 %vm768_vm8, %v3932_v23  ;;  %v3956_v53 = vld [vmem:[#allocation31_spill] sm:$0xff] }
 0x7fe   :  { %2407 = vmatpush.msk.msrb.mxu1 %vm717_vm6, %v3933_v55  ;;  %2409 = vmatpush.msk.msrb.mxu2 %vm717_vm6, %v3934_v57  ;;  %v1795_v28 = vpop.f32.mrf.mxu2 }
 0x7ff   :  { %1989 = vmatpush.msra.mxu3 %v3935_v50 }
 0x800   :  { %2036 = vmatpush.msrb.mxu1 %v3936_v44  ;;  %2060 = vmatpush.msrb.mxu2 %v3937_v54 }
 0x801   :  { %1990 = vmatpush.msra.mxu3 %v3938_v56 }
 0x802   :  { %2037 = vmatpush.msrb.mxu1 %v3939_v58  ;;  %2061 = vmatpush.msrb.mxu2 %v3940_v59 }
 0x803   :  { %2411 = vmatpush.msk.msrb.mxu3 %vm717_vm6, %v3941_v60 }
 0x804   :  { %2038 = vmatpush.msrb.mxu1 %v3942_v48  ;;  %2062 = vmatpush.msrb.mxu2 %v3943_v62 }
 0x805   :  { %2084 = vmatpush.msrb.mxu3 %v3944_v63 }
 0x806   :  { %2415 = vmatpush.msk.msra.mxu1 %vm717_vm6, %v3945_v2  ;;  %2417 = vmatpush.msk.msra.mxu2 %vm717_vm6, %v3946_v3  ;;  %vm2281_vm6 = vcmask 25601  }
 0x807   :  { %2085 = vmatpush.msrb.mxu3 %v3947_v4 }
 0x808   :  { %2132 = vmatpush.msra.mxu1 %v3948_v36  ;;  %2156 = vmatpush.msra.mxu2 %v3949_v27 }
 0x809   :  { %2086 = vmatpush.msrb.mxu3 %v3950_v49 }
 0x80a   :  { %2133 = vmatpush.msra.mxu1 %v3951_v34  ;;  %2157 = vmatpush.msra.mxu2 %v3952_v51 }
 0x80c   :  { %2134 = vmatpush.msra.mxu1 %v3953_v14  ;;  %2158 = vmatpush.msra.mxu2 %v3954_v42 }
 0x852   :  { %v1775_v12 = vpop.f32.mrf.mxu1 }
 0x853   :  { %v1796_v40 = vadd.f32 %v1795_v28, %v1775_v12 }
 0x85b   :  { %v1818_v24 = vpop.f32.mrf.mxu0 }
 0x85c   :  { %v1821_v46 = vadd.f32 %v1818_v24, %v1796_v40 }
 0x863   :  { %v1918_v37 = vpop.f32.mrf.mxu0 }
 0x870   :  { %v1866_v8 = vpop.f32.mrf.mxu2 }
 0x872   :  { %v1842_v20 = vpop.f32.mrf.mxu1 }
 0x873   :  { %v1845_v33 = vadd.f32 %v1842_v20, %v1821_v46 }
 0x875   :  { %v1869_v7 = vadd.f32 %v1866_v8, %v1845_v33 }
 0x87a   :  { %v1942_v10 = vpop.f32.mrf.mxu1 }
 0x87b   :  { %v1894_v1 = vpop.f32.mrf.mxu3 }
 0x87c   :  { %v1897_v16 = vadd.f32 %v1894_v1, %v1869_v7 }
 0x87e   :  { %v1921_v47 = vadd.f32 %v1918_v37, %v1897_v16 }
 0x880   :  { %v1945_v5 = vadd.f32 %v1942_v10, %v1921_v47  ;;  %v1966_v9 = vpop.f32.mrf.mxu2 }
 0x882   :  { %v1969_v19 = vadd.f32 %v1966_v9, %v1945_v5 }
 0x884   :  { %v1970_v45 = vadd.f32 %v1969_v19, %v3290_v13 }
 0x886   :  { %v1971_v38 = vmax.f32 %v1970_v45, 0.0 }
 0x888   :  { %2404 = vmatmul.msk.f32.vlgmr.msra.gmra.mxu3 %vm1016_vm15, %v1971_v38  ;;  %v1996_v35 = vrot.slane %v1971_v38, 1  ;;  %v2020_v32 = vrot.slane %v1971_v38, 2  ;;  %v2044_v21 = vrot.slane %v1971_v38, 3  ;;  %v2068_v13 = vrot.slane %v1971_v38, 4 }
 0x889   :  { %2203 = vmatpush.msra.mxu3 %v3518_v31  ;;  %v2092_v31 = vrot.slane %v1971_v38, 5  ;;  %v2116_v0 = vrot.slane %v1971_v38, 6 }
 0x88a   :  { %2406 = vmatmul.msk.f32.vlgmr.msrb.gmra.mxu0 %vm1016_vm15, %v1996_v35  ;;  %2408 = vmatmul.msk.f32.vlgmr.msrb.gmra.mxu1 %vm1016_vm15, %v2020_v32 }
 0x88b   :  { %2410 = vmatmul.msk.f32.vlgmr.msrb.gmra.mxu2 %vm1016_vm15, %v2044_v21  ;;  %2204 = vmatpush.msra.mxu3 %v3524_v22  ;;  %v2140_v22 = vrot.slane %v1971_v38, 7 }
 0x88c   :  { %2227 = vmatpush.msrb.mxu0 %v3530_v43  ;;  %2251 = vmatpush.msrb.mxu1 %v3537_v25  ;;  %v3957_v43 = vld [vmem:[#allocation32_spill] sm:$0xff]  ;;  %v3958_v25 = vld [vmem:[#allocation33_spill] sm:$0xff] }
 0x88d   :  { %2205 = vmatpush.msra.mxu3 %v3542_v39 }
 0x88e   :  { %2228 = vmatpush.msrb.mxu0 %v3549_v52  ;;  %2252 = vmatpush.msrb.mxu1 %v3557_v29 }
 0x88f   :  { %2206 = vmatpush.msra.mxu3 %v3562_v26 }
 0x890   :  { %2412 = vmatmul.msk.f32.vlgmr.msrb.gmra.mxu3 %vm1016_vm15, %v2068_v13  ;;  %2229 = vmatpush.msrb.mxu0 %v3955_v18  ;;  %v439_v18 = vld [vmem:[%s3848_s17] sm:$0x3]  ;;  %s2499_s17 = smov 4  }
 0x891   :  { %2253 = vmatpush.msrb.mxu1 %v3956_v53  ;;  %v1438_v53 = vmul.f32 -0.5, %v439_v18 }
 0x892   :  { %2414 = vmatmul.msk.f32.vlgmr.msra.gmra.mxu0 %vm1016_vm15, %v2092_v31  ;;  %2416 = vmatmul.msk.f32.vlgmr.msra.gmra.mxu1 %vm1016_vm15, %v2116_v0 }
 0x893   :  { %2418 = vmatmul.msk.f32.vlgmr.msra.gmra.mxu2 %vm1016_vm15, %v2140_v22  ;;  %2230 = vmatpush.msrb.mxu0 %v3957_v43 }
 0x894   :  { %2254 = vmatpush.msrb.mxu1 %v3958_v25  ;;  %v1439_v25 = vmul.f32 %v1438_v53, %v439_v18 }
 0x907   :  { %v2016_v39 = vpop.f32.mrf.mxu0  ;;  %v2040_v26 = vpop.f32.mrf.mxu1 }
 0x90b   :  { %v1992_v52 = vpop.f32.mrf.mxu3 }
 0x90c   :  { %v1995_v29 = vadd.f32 %v1992_v52, %v3617_v6 }
 0x90e   :  { %v2019_v23 = vadd.f32 %v2016_v39, %v1995_v29  ;;  %v2064_v55 = vpop.f32.mrf.mxu2 }
 0x90f   :  { %v2112_v56 = vpop.f32.mrf.mxu0  ;;  %v2136_v59 = vpop.f32.mrf.mxu1 }
 0x910   :  { %v2043_v57 = vadd.f32 %v2040_v26, %v2019_v23 }
 0x912   :  { %v2067_v50 = vadd.f32 %v2064_v55, %v2043_v57 }
 0x913   :  { %v2088_v44 = vpop.f32.mrf.mxu3 }
 0x914   :  { %v2091_v54 = vadd.f32 %v2088_v44, %v2067_v50 }
 0x916   :  { %v2115_v58 = vadd.f32 %v2112_v56, %v2091_v54  ;;  %v2160_v48 = vpop.f32.mrf.mxu2 }
 0x918   :  { %v2139_v60 = vadd.f32 %v2136_v59, %v2115_v58 }
 0x91a   :  { %v2163_v62 = vadd.f32 %v2160_v48, %v2139_v60 }
 0x91c   :  { %v2164_v63 = vsel %vm1322_vm0, %v2163_v62, 0.0 }
 0x91d   :  { %2165 = vadd.xlane.f32.xlu1 %v2164_v63 }
 0x990   :  { %v2166_v2 = vpop.xlane.xlu1 %2165 }
 0x991   :  { %v2167_v3 = vmul.f32 %v2166_v2, %v3626_v15 }
 0x993   :  { %v2168_v6 = vsub.f32 %v2163_v62, %v2167_v3 }
 0x995   :  { %v2169_v4 = vmul.f32 %v2168_v6, %v2168_v6 }
 0x997   :  { %v2170_v36 = vsel %vm1322_vm0, %v2169_v4, 0.0 }
 0x998   :  { %2171 = vadd.xlane.f32.xlu2 %v2170_v36 }
 0xa0b   :  { %v2172_v27 = vpop.xlane.xlu2 %2171 }
 0xa0c   :  { %v2173_v49 = vmul.f32 %v2172_v27, %v3626_v15 }
 0xa0e   :  { %v2174_v34 = vadd.f32 1e-05, %v2173_v49 }
 0xa10   :  { %2461 = vrsqrt.f32 %v2174_v34  ;;  %vm2181_vm4 = vweird.f32 %v2174_v34 }
 0xa16   :  { %v2462_v51 = vpop.eup %2461 }
 0xa17   :  { %v2176_v14 = vmul.f32 %v2462_v51, %v2174_v34  ;;  %vm2182_vm1 = vweird.f32 %v2462_v51 }
 0xa18   :  { %vm2183_vm5 = vmor %vm2181_vm4, %vm2182_vm1 }
 0xa19   :  { %v2177_v42 = vmul.f32 %v2462_v51, %v2176_v14 }
 0xa1b   :  { %v2178_v12 = vmul.f32 0.5, %v2177_v42 }
 0xa1d   :  { %v2179_v28 = vsub.f32 1.5, %v2178_v12 }
 0xa1f   :  { %v2180_v40 = vmul.f32 %v2462_v51, %v2179_v28 }
 0xa21   :  { %v2184_v24 = vsel %vm2183_vm5, %v2462_v51, %v2180_v40 }
 0xa22   :  { %v2185_v46 = vmul.f32 %v2184_v24, %v2168_v6 }
 0xa24   :  { %v2186_v20 = vmul.f32 %v2185_v46, %v3636_v11  ;;  %v438_v11 = vld [vmem:[%s3847_s16] sm:$0x1]  ;;  %s2498_s16 = smov 124  }
 0xa25   :  { %v1424_v47 = vadd.f32 %v3694_v61, %v438_v11 }
 0xa26   :  { %v2187_v33 = vadd.f32 %v2186_v20, %v3641_v17 }
 0xa28   :  { %2419 = vmatmul.msk.f32.vlgmr.msra.gmra.mxu3 %vm1354_vm13, %v2187_v33 }
 0xaab   :  { %v2208_v15 = vpop.f32.mrf.mxu3 }
 0xaac   :  { %v2209_v8 = vadd.f32 %v2208_v15, %v3664_v30 }
 0xaae   :  { %v2211_v7 = vmax.f32 %v2209_v8, 0.0 }
 0xab0   :  { %2420 = vmatmul.msk.f32.vlgmr.msrb.gmra.mxu0 %vm1354_vm13, %v2211_v7 }
 0xb2d   :  { %v2232_v1 = vpop.f32.mrf.mxu0 }
 0xb2e   :  { %v2233_v37 = vadd.f32 %v2232_v1, %v3684_v41 }
 0xb30   :  { %v2235_v16 = vmax.f32 %v2233_v37, 0.0 }
 0xb32   :  { %2421 = vmatmul.msk.f32.vlgmr.msrb.gmra.mxu1 %vm1354_vm13, %v2235_v16 }
 0xbaf   :  { %v2256_v10 = vpop.f32.mrf.mxu1 }
 0xbb0   :  { %v2257_v17 = vadd.f32 %v2256_v10, %v438_v11 }
 0xbb2   :  { %2463 = vtanh.f32 %v2257_v17 }
 0xbb3   :  { %2465 = vtanh.f32 %v1424_v47 }
 0xbb8   :  { %v3803_v5 = vpop.eup %2463 }
 0xbb9   :  { %v2260_v30 = vadd.f32 1.0, %v3803_v5  ;;  %v3806_v45 = vpop.eup %2465 }
 0xbba   :  { %v1427_v38 = vadd.f32 1.0, %v3806_v45 }
 0xbbb   :  { %v2261_v9 = vmul.f32 6.0, %v2260_v30 }
 0xbbc   :  { %v1428_v32 = vmul.f32 6.0, %v1427_v38 }
 0xbbd   :  { %v2262_v19 = vadd.f32 -10.0, %v2261_v9 }
 0xbbe   :  { %v1429_v13 = vadd.f32 -10.0, %v1428_v32 }
 0xbbf   :  { %v2263_v41 = vmul.f32 1.442695, %v2262_v19  ;;  %v2276_v31 = vrot.slane %v2262_v19, 7 }
 0xbc0   :  { %v1430_v61 = vmul.f32 1.442695, %v1429_v13 }
 0xbc1   :  { %2467 = vpow2.f32 %v2263_v41 }
 0xbc2   :  { %2469 = vpow2.f32 %v1430_v61 }
 0xbc7   :  { %v2468_v35 = vpop.eup %2467 }
 0xbc8   :  { %v2266_v21 = vrot.slane %v2468_v35, 7  ;;  %v2470_v0 = vpop.eup %2469 }
 0xbca   :  { %2267 = vrot.lane.b32.xlu0 %v2266_v21, %s2498_s16 }
 0xbd2   :  { %2277 = vrot.lane.b32.xlu0 %v2276_v31, %s2498_s16 }
 0xbda   :  { %1433 = vrot.lane.b32.xlu0 %v2470_v0, %s2498_s16 }
 0xbe2   :  { %1441 = vrot.lane.b32.xlu0 %v1429_v13, %s2498_s16 }
 0xc3c   :  { %v2268_v22 = vpop.permute.xlu0 %2267 }
 0xc3d   :  { %v2270_v43 = vmul.f32 %v2268_v22, %v439_v18 }
 0xc3f   :  { %v2272_v39 = vrot.slane %v2270_v43, 1 }
 0xc41   :  { %v2274_v26 = vadd.f32 %v2272_v39, %v2257_v17 }
 0xc43   :  { %2471 = vtanh.f32 %v2274_v26 }
 0xc44   :  { %v2278_v52 = vpop.permute.xlu0 %2277 }
 0xc45   :  { %v2280_v29 = vsub.f32 %v1439_v25, %v2278_v52 }
 0xc47   :  { %v2282_v23 = vsel %vm2281_vm6, %v2280_v29, 0.0 }
 0xc48   :  { %2283 = vadd.xlane.f32.xlu0 %v2282_v23 }
 0xc49   :  { %v2472_v44 = vpop.eup %2471 }
 0xc4a   :  { %v2287_v56 = vmul.f32 %v2472_v44, %v2472_v44 }
 0xc4c   :  { %v1434_v55 = vpop.permute.xlu0 %1433  ;;  %v2288_v62 = vsub.f32 1.0, %v2287_v56 }
 0xc4d   :  { %v1436_v57 = vmul.f32 %v1434_v55, %v439_v18 }
 0xc4e   :  { %v2289_v3 = vmax.f32 %v2288_v62, 0.0 }
 0xc4f   :  { %v1437_v50 = vadd.f32 %v1436_v57, %v1424_v47 }
 0xc50   :  { %v2290_v4 = vadd.f32 1e-06, %v2289_v3 }
 0xc51   :  { %2473 = vtanh.f32 %v1437_v50 }
 0xc54   :  { %v1442_v54 = vpop.permute.xlu0 %1441 }
 0xc55   :  { %v1444_v58 = vsub.f32 %v1439_v25, %v1442_v54 }
 0xc57   :  { %v2474_v59 = vpop.eup %2473  ;;  %v1446_v60 = vsel %vm1445_vm7, %v1444_v58, 0.0 }
 0xc58   :  { %1447 = vadd.xlane.f32.xlu2 %v1446_v60  ;;  %v1451_v48 = vmul.f32 %v2474_v59, %v2474_v59 }
 0xc5a   :  { %v1452_v63 = vsub.f32 1.0, %v1451_v48 }
 0xc5c   :  { %2304 = vrot.lane.b32.xlu0 %v2262_v19, %s2499_s17  ;;  %v1453_v2 = vmax.f32 %v1452_v63, 0.0 }
 0xc5e   :  { %v1454_v6 = vadd.f32 1e-06, %v1453_v2 }
 0xc60   :  { %2475 = vlog2.f32 %v1454_v6 }
 0xc61   :  { %2477 = vlog2.f32 %v2290_v4 }
 0xc66   :  { %v2476_v36 = vpop.eup %2475 }
 0xc67   :  { %v1456_v27 = vmul.f32 0.6931472, %v2476_v36  ;;  %v2478_v34 = vpop.eup %2477 }
 0xc68   :  { %v2292_v51 = vmul.f32 0.6931472, %v2478_v34 }
 0xc69   :  { %v1457_v49 = vsel %vm1445_vm7, %v1456_v27, 0.0 }
 0xc6a   :  { %1458 = vadd.xlane.f32.xlu1 %v1457_v49  ;;  %v2293_v14 = vsel %vm1445_vm7, %v2292_v51, 0.0 }
 0xc70   :  { %1462 = vrot.lane.b32.xlu2 %v2474_v59, %s2499_s17 }
 0xc72   :  { %2294 = vadd.xlane.f32.xlu1 %v2293_v14 }
 0xc78   :  { %1465 = vrot.lane.b32.xlu2 %v1429_v13, %s2499_s17 }
 0xc8b   :  { %2301 = vrot.lane.b32.xlu1 %v2472_v44, %s2499_s17 }
 0xcbb   :  { %v2284_v7 = vpop.xlane.xlu0 %2283 }
 0xcbc   :  { %v2422_v37 = vadd.f32 -3.675754, %v2284_v7 }
 0xccb   :  { %v1448_v42 = vpop.xlane.xlu2 %1447 }
 0xccc   :  { %v2371_v28 = vadd.f32 -3.675754, %v1448_v42 }
 0xcce   :  { %v2305_v30 = vpop.permute.xlu0 %2304 }
 0xcd3   :  { %v1463_v12 = vpop.permute.xlu2 %1462 }
 0xcd4   :  { %v1468_v46 = vsel %vm443_vm2, %v3806_v45, %v1463_v12 }
 0xcdb   :  { %v1466_v40 = vpop.permute.xlu2 %1465 }
 0xcdc   :  { %v1469_v33 = vsel %vm768_vm8, %v1468_v46, %v1466_v40 }
 0xcdd   :  { %v1459_v24 = vpop.xlane.xlu1 %1458 }
 0xcde   :  { %v1460_v20 = vsub.f32 %v2371_v28, %v1459_v24 }
 0xce0   :  { %v1471_v15 = vsel %vm1470_vm9, %v1469_v33, %v1460_v20 }
 0xce1   :  { %v1473_v8 = vsel %vm1472_vm14, %v1471_v15, 0.0 }
 0xce2   :  { %1474 = vst [vmem:[%s3849_s18] sm:$0x1] %v1473_v8 }
 0xce5   :  { %v2295_v1 = vpop.xlane.xlu1 %2294 }
 0xce6   :  { %v2297_v16 = vrot.slane %v2295_v1, 7 }
 0xce8   :  { %v2299_v11 = vsub.f32 %v2422_v37, %v2297_v16 }
 0xcea   :  { %v2308_v10 = vrot.slane %v2299_v11, 1 }
 0xcec   :  { %2309 = vrot.lane.b32.xlu1 %v2308_v10, %s2500_s1 }
 0xcfd   :  { %v2302_v17 = vpop.permute.xlu1 %2301 }
 0xcfe   :  { %v2312_v47 = vsel %vm443_vm2, %v3803_v5, %v2302_v17 }
 0xcff   :  { %v2313_v19 = vsel %vm768_vm8, %v2312_v47, %v2305_v30 }
 0xd5e   :  { %v2310_v9 = vpop.permute.xlu1 %2309 }
 0xd5f   :  { %v2314_v41 = vsel %vm1470_vm9, %v2313_v19, %v2310_v9 }
 0xd60   :  { %v2315_v45 = vsel %vm1472_vm14, %v2314_v41, 0.0 }
 0xd61   :  { %2316 = vst [vmem:[%s3849_s18 + $0x1] sm:$0x1] %v2315_v45 }

</bundles_post_ra>
